<compile_context>
chip_gen: v6e
topology: v6e:2x2x1
jax: 0.10.0
libtpu: 0.0.40
codegen_flags: <defaults>
</compile_context>

<pallas_src>
import numpy as np
import jax
import jax.numpy as jnp
from jax import lax
from jax.experimental import pallas as pl
from jax.experimental.pallas import tpu as pltpu


def _round_up(x, m):
    return ((x + m - 1) // m) * m


# --------------------------------------------------------------------------- #
# Fused kernel: (pre-gathered) neighbour sequences -> LSTM last hidden state
#               -> out = x @ W_top + h_last @ W_bot
#   grid = (#node tiles,)  "parallel"; time recurrence is an in-kernel loop.
# --------------------------------------------------------------------------- #
def lstm_sage_kernel(nbr_ref, x_ref, len_ref, w_ih_ref, w_hh_ref, b_ref,
                     wtop_ref, wbot_ref, out_ref,
                     gates_scr, h_scr, c_scr, last_scr):
    TB, F = nbr_ref.shape
    B_TILE, H4 = h_scr.shape
    H = H4 // 4
    T = TB // B_TILE

    # ---- hoisted input projection: ONE [T*B_TILE, F] x [F, 4H] MXU call + bias ----
    gates_scr[...] = (
        jnp.dot(nbr_ref[...], w_ih_ref[...], preferred_element_type=jnp.float32)
        + b_ref[...])

    h_scr[...] = jnp.zeros_like(h_scr)
    c_scr[...] = jnp.zeros_like(c_scr)
    last_scr[...] = jnp.zeros_like(last_scr)

    # Hoisted lane constants (do not rebuild per timestep).
    lane = lax.broadcasted_iota(jnp.int32, (B_TILE, H4), 1)
    is_g = (lane >= 2 * H) & (lane < 3 * H)
    # sigmoid(x) = 0.5 * tanh(0.5 * x) + 0.5  ->  single full-width tanh per step
    pre = jnp.where(is_g, 1.0, 0.5).astype(jnp.float32)
    post_mul = pre
    post_add = jnp.where(is_g, 0.0, 0.5).astype(jnp.float32)
    lens = len_ref[...]                                      # [B_TILE, 1] int32

    def step(t):
        off = t * B_TILE
        if not isinstance(off, int):
            off = pl.multiple_of(off, B_TILE)
        gx = gates_scr[pl.ds(off, B_TILE), :]                 # [B_TILE, 4H] f32, order i|f|g|o
        gates = gx + jnp.dot(h_scr[...].astype(jnp.bfloat16), w_hh_ref[...],
                             preferred_element_type=jnp.float32)
        # One EUP tanh over the full 4H-lane vreg; sigmoid lanes via a cheap VPU affine.
        act = post_mul * jnp.tanh(pre * gates) + post_add
        # Align f/g/o slabs onto the c/h lanes [0, H) with XLU lane rolls (no narrow slices).
        f_al = pltpu.roll(act, 3 * H, axis=1)
        g_al = pltpu.roll(act, 2 * H, axis=1)
        o_al = pltpu.roll(act, 1 * H, axis=1)
        c_new = f_al * c_scr[...] + act * g_al                # lanes >= H: bounded dead values
        h_new = o_al * jnp.tanh(c_new)
        c_scr[...] = c_new
        h_scr[...] = h_new                                    # dead lanes killed by zero W_hh rows
        # Capture h at each sequence's last valid timestep (len-0 rows stay all-zero).
        last_scr[...] = jnp.where(lens == t + 1, h_new, last_scr[...])

    if T <= 16:
        for t in range(T):                                    # full static unroll
            step(t)
    else:
        def body(t, carry):
            step(t)
            return carry
        lax.fori_loop(0, T, body, 0, unroll=4)

    # ---- fused scatter + concat + projection (rows already node-aligned) ----
    out_ref[...] = (
        jnp.dot(x_ref[...], wtop_ref[...], preferred_element_type=jnp.float32)
        + jnp.dot(last_scr[...].astype(jnp.bfloat16), wbot_ref[...],
                  preferred_element_type=jnp.float32))


# --------------------------------------------------------------------------- #
# Full forward pass (host-side grouping glue + one Pallas kernel)
# --------------------------------------------------------------------------- #
def lstm_aggregator_forward(input_matrix, edge_src, edge_trg, params, *, b_tile=128):
    N, F_in = input_matrix.shape
    H = params["w_hh"].shape[0]
    H4 = 4 * H
    F_out = params["weights_matrix"].shape[1]
    assert H4 % 128 == 0, "hidden dim chosen so 4H is lane-dense (multiple of 128)"

    # ---- host-side grouping (data-dependent shapes; scatter_split / pack_sequence) ----
    # The LSTM batch is node-aligned: row n is node n's neighbour sequence (length 0 if it
    # has no in-edges), which makes the scatter into `aggregated` and the later gather a
    # no-op: a length-0 row yields a zero hidden state, exactly what the module writes.
    edge_src = np.asarray(edge_src, dtype=np.int64)
    edge_trg = np.asarray(edge_trg, dtype=np.int64)
    N_pad = _round_up(N, b_tile)
    ngrid = N_pad // b_tile

    counts = np.zeros((N_pad,), np.int64)
    np.add.at(counts, edge_src, 1)
    T = int(max(int(counts.max()) if counts.size else 0, 1))
    padded_idx = np.zeros((T, N_pad), np.int32)            # dummy neighbour id 0 on padding
    fill = np.zeros((N_pad,), np.int64)
    for s_node, t_node in zip(edge_src, edge_trg):
        padded_idx[fill[s_node], s_node] = t_node          # deterministic neighbour order
        fill[s_node] += 1
    lengths = counts.reshape(N_pad, 1).astype(np.int32)

    # Tile-major flattened gather index: row i*(T*b_tile) + t*b_tile + b holds neighbour t of
    # node (i*b_tile + b), so every grid tile streams one contiguous [T*b_tile, F] slab.
    flat_idx = padded_idx.reshape(T, ngrid, b_tile).transpose(1, 0, 2).reshape(-1)

    # ---- bf16 HBM streams / MXU operands (f32 accumulation and state in-kernel) ----
    feat_bf = input_matrix.astype(jnp.bfloat16)
    x_pad = jnp.zeros((N_pad, F_in), jnp.bfloat16).at[:N].set(feat_bf)
    nbr = jnp.take(feat_bf, jnp.asarray(flat_idx, dtype=jnp.int32), axis=0)   # [N_pad*T, F]

    w_ih = params["w_ih"].astype(jnp.bfloat16)                                # [F, 4H]
    w_hh_pad = jnp.zeros((H4, H4), jnp.bfloat16).at[:H].set(
        params["w_hh"].astype(jnp.bfloat16))                                  # [4H, 4H]
    bias = params["bias"].astype(jnp.float32)                                 # [1, 4H]
    W = params["weights_matrix"]
    Fo_pad = _round_up(max(F_out, 128), 128)                                  # lane-dense stores
    w_top = jnp.zeros((F_in, Fo_pad), jnp.bfloat16).at[:, :F_out].set(
        W[:F_in].astype(jnp.bfloat16))
    w_bot = jnp.zeros((H4, Fo_pad), jnp.bfloat16).at[:H, :F_out].set(
        W[F_in:].astype(jnp.bfloat16))

    flops = (2 * N_pad * T * F_in * H4 + 2 * N_pad * T * H4 * H4
             + 12 * N_pad * T * H4 + 2 * N_pad * (F_in + H4) * Fo_pad)
    bytes_accessed = (N_pad * T * F_in * 2 + N_pad * F_in * 2 + N_pad * 4
                      + 2 * (F_in * H4 + H4 * H4 + (F_in + H4) * Fo_pad) + 4 * H4
                      + N_pad * Fo_pad * 4)

    out_pad = pl.pallas_call(
        lstm_sage_kernel,
        out_shape=jax.ShapeDtypeStruct((N_pad, Fo_pad), jnp.float32),
        grid_spec=pltpu.PrefetchScalarGridSpec(
            num_scalar_prefetch=0,
            grid=(ngrid,),                                        # independent node tiles
            in_specs=[
                pl.BlockSpec((T * b_tile, F_in), lambda i: (i, 0)),   # pre-gathered neighbours
                pl.BlockSpec((b_tile, F_in), lambda i: (i, 0)),       # node's own features
                pl.BlockSpec((b_tile, 1), lambda i: (i, 0)),          # sequence lengths
                pl.BlockSpec((F_in, H4), lambda i: (0, 0)),           # W_ih (grid-invariant)
                pl.BlockSpec((H4, H4), lambda i: (0, 0)),             # W_hh (rows >= H zero)
                pl.BlockSpec((1, H4), lambda i: (0, 0)),              # bias
                pl.BlockSpec((F_in, Fo_pad), lambda i: (0, 0)),       # W_top
                pl.BlockSpec((H4, Fo_pad), lambda i: (0, 0)),         # W_bot (rows >= H zero)
            ],
            out_specs=pl.BlockSpec((b_tile, Fo_pad), lambda i: (i, 0)),   # lane-dense store
            scratch_shapes=[
                pltpu.VMEM((T * b_tile, H4), jnp.float32),    # precomputed input gates
                pltpu.VMEM((b_tile, H4), jnp.float32),        # h
                pltpu.VMEM((b_tile, H4), jnp.float32),        # c
                pltpu.VMEM((b_tile, H4), jnp.float32),        # h at last valid timestep
            ],
        ),
        compiler_params=pltpu.CompilerParams(
            dimension_semantics=("parallel",),                # node tiles -> both TCs on v7x
            vmem_limit_bytes=32 * 1024 * 1024,
        ),
        cost_estimate=pl.CostEstimate(
            flops=int(flops),
            transcendentals=int(2 * N_pad * T * H4),
            bytes_accessed=int(bytes_accessed),
        ),
    )(nbr, x_pad, jnp.asarray(lengths), w_ih, w_hh_pad, bias, w_top, w_bot)

    return out_pad[:N, :F_out]


# --------------------------------------------------------------------------- #
# Pure-JAX reference (f32) for correctness checking
# --------------------------------------------------------------------------- #
def reference_forward(input_matrix, edge_src, edge_trg, params):
    N, F_in = input_matrix.shape
    H = params["w_hh"].shape[0]
    edge_src = np.asarray(edge_src)
    edge_trg = np.asarray(edge_trg)
    uniq = np.unique(edge_src)
    groups = [edge_trg[edge_src == u] for u in uniq]
    B = len(groups)
    T = max(len(g) for g in groups)
    pad = np.zeros((T, B), np.int32)
    lens = np.zeros((B,), np.int32)
    for j, g in enumerate(groups):
        pad[: len(g), j] = g
        lens[j] = len(g)

    xs = jnp.take(input_matrix, jnp.asarray(pad), axis=0)        # [T, B, F]
    w_ih, w_hh, b = params["w_ih"], params["w_hh"], params["bias"]

    def step(carry, x_t):
        h, c = carry
        gates = x_t @ w_ih + h @ w_hh + b
        i = jax.nn.sigmoid(gates[:, :H])
        f = jax.nn.sigmoid(gates[:, H:2 * H])
        g = jnp.tanh(gates[:, 2 * H:3 * H])
        o = jax.nn.sigmoid(gates[:, 3 * H:])
        c = f * c + i * g
        h = o * jnp.tanh(c)
        return (h, c), h

    (_, _), hs = lax.scan(step, (jnp.zeros((B, H)), jnp.zeros((B, H))), xs)
    last = hs[jnp.asarray(lens) - 1, jnp.arange(B)]              # [B, H]
    agg = jnp.zeros((N, H), jnp.float32).at[jnp.asarray(uniq)].set(last)
    concat = jnp.concatenate([input_matrix, agg], axis=1)
    return concat @ params["weights_matrix"]


# --------------------------------------------------------------------------- #
# Deterministic parameter init (matches module __init__ shapes / distributions)
# --------------------------------------------------------------------------- #
def init_params(key, f_in, f_out, hidden):
    k1, k2, k3, k4, k5 = jax.random.split(key, 5)
    bound_w = float(np.sqrt(6.0 / ((f_in + hidden) + f_out)))     # xavier_uniform_
    weights_matrix = jax.random.uniform(
        k1, (f_in + hidden, f_out), jnp.float32, -bound_w, bound_w)
    bound_l = 1.0 / float(np.sqrt(hidden))                        # nn.LSTM default init
    w_ih = jax.random.uniform(k2, (f_in, 4 * hidden), jnp.float32, -bound_l, bound_l)
    w_hh = jax.random.uniform(k3, (hidden, 4 * hidden), jnp.float32, -bound_l, bound_l)
    b_ih = jax.random.uniform(k4, (1, 4 * hidden), jnp.float32, -bound_l, bound_l)
    b_hh = jax.random.uniform(k5, (1, 4 * hidden), jnp.float32, -bound_l, bound_l)
    return {
        "weights_matrix": weights_matrix,
        "w_ih": w_ih,          # gate order i | f | g | o along the 4H axis
        "w_hh": w_hh,
        "bias": b_ih + b_hh,
    }


if __name__ == "__main__":
    N, F_IN, HIDDEN, F_OUT = 16, 16, 32, 16

    key = jax.random.PRNGKey(0)
    k_x, k_p = jax.random.split(key)
    input_matrix = jax.random.normal(k_x, (N, F_IN), dtype=jnp.float32)
    params = init_params(k_p, F_IN, F_OUT, HIDDEN)

    # Deterministic small graph: node i has (i % 3) + 1 neighbours.
    src_list, trg_list = [], []
    for i in range(N):
        for d in range((i % 3) + 1):
            src_list.append(i)
            trg_list.append((i + d + 1) % N)
    edge_src = np.array(src_list, dtype=np.int32)
    edge_trg = np.array(trg_list, dtype=np.int32)

    out = lstm_aggregator_forward(input_matrix, edge_src, edge_trg, params)
    out = jax.block_until_ready(out)
    assert out.shape == (N, F_OUT)
    assert bool(jnp.all(jnp.isfinite(out)))

    # Check vs. an f32 reference; also validates the roll-based gate alignment (a swapped
    # f/g/o gate would blow far past this tolerance).  Kernel uses bf16 MXU operands.
    ref = jax.block_until_ready(reference_forward(input_matrix, edge_src, edge_trg, params))
    err = float(jnp.max(jnp.abs(out - ref)))
    scale = float(jnp.max(jnp.abs(ref)))
    assert err <= 0.05 + 0.05 * scale, f"kernel/reference mismatch: max err {err:.4f}"

    print("KERNEL_OK")
</pallas_src>

<mosaic_0001>
module attributes {stable_mosaic.version = 11 : i64} {
  func.func @lstm_sage_kernel(%arg0: i32, %arg1: memref<384x16xbf16, #tpu.memory_space<vmem>>, %arg2: memref<128x16xbf16, #tpu.memory_space<vmem>>, %arg3: memref<128x1xi32, #tpu.memory_space<vmem>>, %arg4: memref<16x128xbf16, #tpu.memory_space<vmem>>, %arg5: memref<128x128xbf16, #tpu.memory_space<vmem>>, %arg6: memref<1x128xf32, #tpu.memory_space<vmem>>, %arg7: memref<16x128xbf16, #tpu.memory_space<vmem>>, %arg8: memref<128x128xbf16, #tpu.memory_space<vmem>>, %arg9: memref<128x128xf32, #tpu.memory_space<vmem>>, %arg10: memref<384x128xf32, #tpu.memory_space<vmem>>, %arg11: memref<128x128xf32, #tpu.memory_space<vmem>>, %arg12: memref<128x128xf32, #tpu.memory_space<vmem>>, %arg13: memref<128x128xf32, #tpu.memory_space<vmem>>) attributes {dimension_semantics = [#tpu.dimension_semantics<parallel>], iteration_bounds = array<i64: 1>, scalar_prefetch = 0 : i64, scratch_operands = 4 : i64, tpu.core_type = #tpu.core_type<tc>, window_params = [{transform_indices = @transform_0, window_bounds = array<i64: 384, 16>}, {transform_indices = @transform_1, window_bounds = array<i64: 128, 16>}, {transform_indices = @transform_2, window_bounds = array<i64: 128, 1>}, {pipeline_mode = #tpu.pipeline_mode<synchronous>, transform_indices = @transform_3, window_bounds = array<i64: 16, 128>}, {pipeline_mode = #tpu.pipeline_mode<synchronous>, transform_indices = @transform_4, window_bounds = array<i64: 128, 128>}, {pipeline_mode = #tpu.pipeline_mode<synchronous>, transform_indices = @transform_5, window_bounds = array<i64: 1, 128>}, {pipeline_mode = #tpu.pipeline_mode<synchronous>, transform_indices = @transform_6, window_bounds = array<i64: 16, 128>}, {pipeline_mode = #tpu.pipeline_mode<synchronous>, transform_indices = @transform_7, window_bounds = array<i64: 128, 128>}, {transform_indices = @transform_8, window_bounds = array<i64: 128, 128>}]} {
    %c0 = arith.constant 0 : index
    %c0_0 = arith.constant 0 : index
    %0 = vector.load %arg1[%c0, %c0_0] : memref<384x16xbf16, #tpu.memory_space<vmem>>, vector<384x16xbf16>
    %c0_1 = arith.constant 0 : index
    %c0_2 = arith.constant 0 : index
    %1 = vector.load %arg4[%c0_1, %c0_2] : memref<16x128xbf16, #tpu.memory_space<vmem>>, vector<16x128xbf16>
    %cst = arith.constant dense<0.000000e+00> : vector<384x128xf32>
    %2 = tpu.matmul %0, %1, %cst {dimension_numbers = #tpu.dot_dimension_numbers<[1], [0], [0], [1], [0, 0, 1, 1], [], []>} : vector<384x16xbf16>, vector<16x128xbf16>, vector<384x128xf32> -> vector<384x128xf32>
    %c0_3 = arith.constant 0 : index
    %c0_4 = arith.constant 0 : index
    %3 = vector.load %arg6[%c0_3, %c0_4] : memref<1x128xf32, #tpu.memory_space<vmem>>, vector<1x128xf32>
    %4 = vector.broadcast %3 : vector<1x128xf32> to vector<384x128xf32>
    %5 = arith.addf %2, %4 : vector<384x128xf32>
    %c0_5 = arith.constant 0 : index
    %c0_6 = arith.constant 0 : index
    %6 = vector.load %arg10[%c0_5, %c0_6] : memref<384x128xf32, #tpu.memory_space<vmem>>, vector<384x128xf32>
    tpu.vector_store %arg10[%c0_5, %c0_6], %5 {strides = array<i32>} : memref<384x128xf32, #tpu.memory_space<vmem>>, vector<384x128xf32>,
    %cst_7 = arith.constant 0.000000e+00 : f32
    %7 = vector.broadcast %cst_7 : f32 to vector<128x128xf32>
    %c0_8 = arith.constant 0 : index
    %c0_9 = arith.constant 0 : index
    %8 = vector.load %arg11[%c0_8, %c0_9] : memref<128x128xf32, #tpu.memory_space<vmem>>, vector<128x128xf32>
    tpu.vector_store %arg11[%c0_8, %c0_9], %7 {strides = array<i32>} : memref<128x128xf32, #tpu.memory_space<vmem>>, vector<128x128xf32>,
    %cst_10 = arith.constant 0.000000e+00 : f32
    %9 = vector.broadcast %cst_10 : f32 to vector<128x128xf32>
    %c0_11 = arith.constant 0 : index
    %c0_12 = arith.constant 0 : index
    %10 = vector.load %arg12[%c0_11, %c0_12] : memref<128x128xf32, #tpu.memory_space<vmem>>, vector<128x128xf32>
    tpu.vector_store %arg12[%c0_11, %c0_12], %9 {strides = array<i32>} : memref<128x128xf32, #tpu.memory_space<vmem>>, vector<128x128xf32>,
    %cst_13 = arith.constant 0.000000e+00 : f32
    %11 = vector.broadcast %cst_13 : f32 to vector<128x128xf32>
    %c0_14 = arith.constant 0 : index
    %c0_15 = arith.constant 0 : index
    %12 = vector.load %arg13[%c0_14, %c0_15] : memref<128x128xf32, #tpu.memory_space<vmem>>, vector<128x128xf32>
    tpu.vector_store %arg13[%c0_14, %c0_15], %11 {strides = array<i32>} : memref<128x128xf32, #tpu.memory_space<vmem>>, vector<128x128xf32>,
    %13 = tpu.iota {dimensions = array<i32: 1>} : vector<128x128xi32>
    %c64_i32 = arith.constant 64 : i32
    %14 = vector.broadcast %c64_i32 : i32 to vector<128x128xi32>
    %15 = arith.cmpi sge, %13, %14 : vector<128x128xi32>
    %c96_i32 = arith.constant 96 : i32
    %16 = vector.broadcast %c96_i32 : i32 to vector<128x128xi32>
    %17 = arith.cmpi slt, %13, %16 : vector<128x128xi32>
    %18 = arith.andi %15, %17 : vector<128x128xi1>
    %cst_16 = arith.constant 1.000000e+00 : f32
    %cst_17 = arith.constant 5.000000e-01 : f32
    %19 = vector.broadcast %cst_16 : f32 to vector<128x128xf32>
    %20 = vector.broadcast %cst_17 : f32 to vector<128x128xf32>
    %21 = arith.select %18, %19, %20 : vector<128x128xi1>, vector<128x128xf32>
    %cst_18 = arith.constant 0.000000e+00 : f32
    %cst_19 = arith.constant 5.000000e-01 : f32
    %22 = vector.broadcast %cst_18 : f32 to vector<128x128xf32>
    %23 = vector.broadcast %cst_19 : f32 to vector<128x128xf32>
    %24 = arith.select %18, %22, %23 : vector<128x128xi1>, vector<128x128xf32>
    %c0_20 = arith.constant 0 : index
    %c0_21 = arith.constant 0 : index
    %25 = vector.load %arg3[%c0_20, %c0_21] : memref<128x1xi32, #tpu.memory_space<vmem>>, vector<128x1xi32>
    %c0_22 = arith.constant 0 : index
    %c0_23 = arith.constant 0 : index
    %26 = vector.load %arg10[%c0_22, %c0_23] : memref<384x128xf32, #tpu.memory_space<vmem>>, vector<128x128xf32>
    %c0_24 = arith.constant 0 : index
    %c0_25 = arith.constant 0 : index
    %27 = vector.load %arg11[%c0_24, %c0_25] : memref<128x128xf32, #tpu.memory_space<vmem>>, vector<128x128xf32>
    %28 = arith.truncf %27 : vector<128x128xf32> to vector<128x128xbf16>
    %c0_26 = arith.constant 0 : index
    %c0_27 = arith.constant 0 : index
    %29 = vector.load %arg5[%c0_26, %c0_27] : memref<128x128xbf16, #tpu.memory_space<vmem>>, vector<128x128xbf16>
    %cst_28 = arith.constant dense<0.000000e+00> : vector<128x128xf32>
    %30 = tpu.matmul %28, %29, %cst_28 {dimension_numbers = #tpu.dot_dimension_numbers<[1], [0], [0], [1], [0, 0, 1, 1], [], []>} : vector<128x128xbf16>, vector<128x128xbf16>, vector<128x128xf32> -> vector<128x128xf32>
    %31 = arith.addf %26, %30 : vector<128x128xf32>
    %32 = arith.mulf %21, %31 : vector<128x128xf32>
    %33 = math.tanh %32 : vector<128x128xf32>
    %34 = arith.mulf %21, %33 : vector<128x128xf32>
    %35 = arith.addf %34, %24 : vector<128x128xf32>
    %c96_i32_29 = arith.constant 96 : i32
    %36 = tpu.dynamic_rotate %35 by %c96_i32_29 dim 1 : vector<128x128xf32>, i32 -> vector<128x128xf32>
    %c64_i32_30 = arith.constant 64 : i32
    %37 = tpu.dynamic_rotate %35 by %c64_i32_30 dim 1 : vector<128x128xf32>, i32 -> vector<128x128xf32>
    %c32_i32 = arith.constant 32 : i32
    %38 = tpu.dynamic_rotate %35 by %c32_i32 dim 1 : vector<128x128xf32>, i32 -> vector<128x128xf32>
    %c0_31 = arith.constant 0 : index
    %c0_32 = arith.constant 0 : index
    %39 = vector.load %arg12[%c0_31, %c0_32] : memref<128x128xf32, #tpu.memory_space<vmem>>, vector<128x128xf32>
    %40 = arith.mulf %36, %39 : vector<128x128xf32>
    %41 = arith.mulf %35, %37 : vector<128x128xf32>
    %42 = arith.addf %40, %41 : vector<128x128xf32>
    %43 = math.tanh %42 : vector<128x128xf32>
    %44 = arith.mulf %38, %43 : vector<128x128xf32>
    %c0_33 = arith.constant 0 : index
    %c0_34 = arith.constant 0 : index
    %45 = vector.load %arg12[%c0_33, %c0_34] : memref<128x128xf32, #tpu.memory_space<vmem>>, vector<128x128xf32>
    tpu.vector_store %arg12[%c0_33, %c0_34], %42 {strides = array<i32>} : memref<128x128xf32, #tpu.memory_space<vmem>>, vector<128x128xf32>,
    %c0_35 = arith.constant 0 : index
    %c0_36 = arith.constant 0 : index
    %46 = vector.load %arg11[%c0_35, %c0_36] : memref<128x128xf32, #tpu.memory_space<vmem>>, vector<128x128xf32>
    tpu.vector_store %arg11[%c0_35, %c0_36], %44 {strides = array<i32>} : memref<128x128xf32, #tpu.memory_space<vmem>>, vector<128x128xf32>,
    %c1_i32 = arith.constant 1 : i32
    %47 = vector.broadcast %c1_i32 : i32 to vector<128x1xi32>
    %48 = arith.cmpi eq, %25, %47 : vector<128x1xi32>
    %c0_37 = arith.constant 0 : index
    %c0_38 = arith.constant 0 : index
    %49 = vector.load %arg13[%c0_37, %c0_38] : memref<128x128xf32, #tpu.memory_space<vmem>>, vector<128x128xf32>
    %50 = vector.shape_cast %48 : vector<128x1xi1> to vector<128x1xi1>
    %51 = vector.broadcast %50 : vector<128x1xi1> to vector<128x128xi1>
    %52 = arith.select %51, %44, %49 : vector<128x128xi1>, vector<128x128xf32>
    %c0_39 = arith.constant 0 : index
    %c0_40 = arith.constant 0 : index
    %53 = vector.load %arg13[%c0_39, %c0_40] : memref<128x128xf32, #tpu.memory_space<vmem>>, vector<128x128xf32>
    tpu.vector_store %arg13[%c0_39, %c0_40], %52 {strides = array<i32>} : memref<128x128xf32, #tpu.memory_space<vmem>>, vector<128x128xf32>,
    %c128 = arith.constant 128 : index
    %c0_41 = arith.constant 0 : index
    %54 = vector.load %arg10[%c128, %c0_41] : memref<384x128xf32, #tpu.memory_space<vmem>>, vector<128x128xf32>
    %c0_42 = arith.constant 0 : index
    %c0_43 = arith.constant 0 : index
    %55 = vector.load %arg11[%c0_42, %c0_43] : memref<128x128xf32, #tpu.memory_space<vmem>>, vector<128x128xf32>
    %56 = arith.truncf %55 : vector<128x128xf32> to vector<128x128xbf16>
    %c0_44 = arith.constant 0 : index
    %c0_45 = arith.constant 0 : index
    %57 = vector.load %arg5[%c0_44, %c0_45] : memref<128x128xbf16, #tpu.memory_space<vmem>>, vector<128x128xbf16>
    %cst_46 = arith.constant dense<0.000000e+00> : vector<128x128xf32>
    %58 = tpu.matmul %56, %57, %cst_46 {dimension_numbers = #tpu.dot_dimension_numbers<[1], [0], [0], [1], [0, 0, 1, 1], [], []>} : vector<128x128xbf16>, vector<128x128xbf16>, vector<128x128xf32> -> vector<128x128xf32>
    %59 = arith.addf %54, %58 : vector<128x128xf32>
    %60 = arith.mulf %21, %59 : vector<128x128xf32>
    %61 = math.tanh %60 : vector<128x128xf32>
    %62 = arith.mulf %21, %61 : vector<128x128xf32>
    %63 = arith.addf %62, %24 : vector<128x128xf32>
    %c96_i32_47 = arith.constant 96 : i32
    %64 = tpu.dynamic_rotate %63 by %c96_i32_47 dim 1 : vector<128x128xf32>, i32 -> vector<128x128xf32>
    %c64_i32_48 = arith.constant 64 : i32
    %65 = tpu.dynamic_rotate %63 by %c64_i32_48 dim 1 : vector<128x128xf32>, i32 -> vector<128x128xf32>
    %c32_i32_49 = arith.constant 32 : i32
    %66 = tpu.dynamic_rotate %63 by %c32_i32_49 dim 1 : vector<128x128xf32>, i32 -> vector<128x128xf32>
    %c0_50 = arith.constant 0 : index
    %c0_51 = arith.constant 0 : index
    %67 = vector.load %arg12[%c0_50, %c0_51] : memref<128x128xf32, #tpu.memory_space<vmem>>, vector<128x128xf32>
    %68 = arith.mulf %64, %67 : vector<128x128xf32>
    %69 = arith.mulf %63, %65 : vector<128x128xf32>
    %70 = arith.addf %68, %69 : vector<128x128xf32>
    %71 = math.tanh %70 : vector<128x128xf32>
    %72 = arith.mulf %66, %71 : vector<128x128xf32>
    %c0_52 = arith.constant 0 : index
    %c0_53 = arith.constant 0 : index
    %73 = vector.load %arg12[%c0_52, %c0_53] : memref<128x128xf32, #tpu.memory_space<vmem>>, vector<128x128xf32>
    tpu.vector_store %arg12[%c0_52, %c0_53], %70 {strides = array<i32>} : memref<128x128xf32, #tpu.memory_space<vmem>>, vector<128x128xf32>,
    %c0_54 = arith.constant 0 : index
    %c0_55 = arith.constant 0 : index
    %74 = vector.load %arg11[%c0_54, %c0_55] : memref<128x128xf32, #tpu.memory_space<vmem>>, vector<128x128xf32>
    tpu.vector_store %arg11[%c0_54, %c0_55], %72 {strides = array<i32>} : memref<128x128xf32, #tpu.memory_space<vmem>>, vector<128x128xf32>,
    %c2_i32 = arith.constant 2 : i32
    %75 = vector.broadcast %c2_i32 : i32 to vector<128x1xi32>
    %76 = arith.cmpi eq, %25, %75 : vector<128x1xi32>
    %c0_56 = arith.constant 0 : index
    %c0_57 = arith.constant 0 : index
    %77 = vector.load %arg13[%c0_56, %c0_57] : memref<128x128xf32, #tpu.memory_space<vmem>>, vector<128x128xf32>
    %78 = vector.shape_cast %76 : vector<128x1xi1> to vector<128x1xi1>
    %79 = vector.broadcast %78 : vector<128x1xi1> to vector<128x128xi1>
    %80 = arith.select %79, %72, %77 : vector<128x128xi1>, vector<128x128xf32>
    %c0_58 = arith.constant 0 : index
    %c0_59 = arith.constant 0 : index
    %81 = vector.load %arg13[%c0_58, %c0_59] : memref<128x128xf32, #tpu.memory_space<vmem>>, vector<128x128xf32>
    tpu.vector_store %arg13[%c0_58, %c0_59], %80 {strides = array<i32>} : memref<128x128xf32, #tpu.memory_space<vmem>>, vector<128x128xf32>,
    %c256 = arith.constant 256 : index
    %c0_60 = arith.constant 0 : index
    %82 = vector.load %arg10[%c256, %c0_60] : memref<384x128xf32, #tpu.memory_space<vmem>>, vector<128x128xf32>
    %c0_61 = arith.constant 0 : index
    %c0_62 = arith.constant 0 : index
    %83 = vector.load %arg11[%c0_61, %c0_62] : memref<128x128xf32, #tpu.memory_space<vmem>>, vector<128x128xf32>
    %84 = arith.truncf %83 : vector<128x128xf32> to vector<128x128xbf16>
    %c0_63 = arith.constant 0 : index
    %c0_64 = arith.constant 0 : index
    %85 = vector.load %arg5[%c0_63, %c0_64] : memref<128x128xbf16, #tpu.memory_space<vmem>>, vector<128x128xbf16>
    %cst_65 = arith.constant dense<0.000000e+00> : vector<128x128xf32>
    %86 = tpu.matmul %84, %85, %cst_65 {dimension_numbers = #tpu.dot_dimension_numbers<[1], [0], [0], [1], [0, 0, 1, 1], [], []>} : vector<128x128xbf16>, vector<128x128xbf16>, vector<128x128xf32> -> vector<128x128xf32>
    %87 = arith.addf %82, %86 : vector<128x128xf32>
    %88 = arith.mulf %21, %87 : vector<128x128xf32>
    %89 = math.tanh %88 : vector<128x128xf32>
    %90 = arith.mulf %21, %89 : vector<128x128xf32>
    %91 = arith.addf %90, %24 : vector<128x128xf32>
    %c96_i32_66 = arith.constant 96 : i32
    %92 = tpu.dynamic_rotate %91 by %c96_i32_66 dim 1 : vector<128x128xf32>, i32 -> vector<128x128xf32>
    %c64_i32_67 = arith.constant 64 : i32
    %93 = tpu.dynamic_rotate %91 by %c64_i32_67 dim 1 : vector<128x128xf32>, i32 -> vector<128x128xf32>
    %c32_i32_68 = arith.constant 32 : i32
    %94 = tpu.dynamic_rotate %91 by %c32_i32_68 dim 1 : vector<128x128xf32>, i32 -> vector<128x128xf32>
    %c0_69 = arith.constant 0 : index
    %c0_70 = arith.constant 0 : index
    %95 = vector.load %arg12[%c0_69, %c0_70] : memref<128x128xf32, #tpu.memory_space<vmem>>, vector<128x128xf32>
    %96 = arith.mulf %92, %95 : vector<128x128xf32>
    %97 = arith.mulf %91, %93 : vector<128x128xf32>
    %98 = arith.addf %96, %97 : vector<128x128xf32>
    %99 = math.tanh %98 : vector<128x128xf32>
    %100 = arith.mulf %94, %99 : vector<128x128xf32>
    %c0_71 = arith.constant 0 : index
    %c0_72 = arith.constant 0 : index
    %101 = vector.load %arg12[%c0_71, %c0_72] : memref<128x128xf32, #tpu.memory_space<vmem>>, vector<128x128xf32>
    tpu.vector_store %arg12[%c0_71, %c0_72], %98 {strides = array<i32>} : memref<128x128xf32, #tpu.memory_space<vmem>>, vector<128x128xf32>,
    %c0_73 = arith.constant 0 : index
    %c0_74 = arith.constant 0 : index
    %102 = vector.load %arg11[%c0_73, %c0_74] : memref<128x128xf32, #tpu.memory_space<vmem>>, vector<128x128xf32>
    tpu.vector_store %arg11[%c0_73, %c0_74], %100 {strides = array<i32>} : memref<128x128xf32, #tpu.memory_space<vmem>>, vector<128x128xf32>,
    %c3_i32 = arith.constant 3 : i32
    %103 = vector.broadcast %c3_i32 : i32 to vector<128x1xi32>
    %104 = arith.cmpi eq, %25, %103 : vector<128x1xi32>
    %c0_75 = arith.constant 0 : index
    %c0_76 = arith.constant 0 : index
    %105 = vector.load %arg13[%c0_75, %c0_76] : memref<128x128xf32, #tpu.memory_space<vmem>>, vector<128x128xf32>
    %106 = vector.shape_cast %104 : vector<128x1xi1> to vector<128x1xi1>
    %107 = vector.broadcast %106 : vector<128x1xi1> to vector<128x128xi1>
    %108 = arith.select %107, %100, %105 : vector<128x128xi1>, vector<128x128xf32>
    %c0_77 = arith.constant 0 : index
    %c0_78 = arith.constant 0 : index
    %109 = vector.load %arg13[%c0_77, %c0_78] : memref<128x128xf32, #tpu.memory_space<vmem>>, vector<128x128xf32>
    tpu.vector_store %arg13[%c0_77, %c0_78], %108 {strides = array<i32>} : memref<128x128xf32, #tpu.memory_space<vmem>>, vector<128x128xf32>,
    %c0_79 = arith.constant 0 : index
    %c0_80 = arith.constant 0 : index
    %110 = vector.load %arg2[%c0_79, %c0_80] : memref<128x16xbf16, #tpu.memory_space<vmem>>, vector<128x16xbf16>
    %c0_81 = arith.constant 0 : index
    %c0_82 = arith.constant 0 : index
    %111 = vector.load %arg7[%c0_81, %c0_82] : memref<16x128xbf16, #tpu.memory_space<vmem>>, vector<16x128xbf16>
    %cst_83 = arith.constant dense<0.000000e+00> : vector<128x128xf32>
    %112 = tpu.matmul %110, %111, %cst_83 {dimension_numbers = #tpu.dot_dimension_numbers<[1], [0], [0], [1], [0, 0, 1, 1], [], []>} : vector<128x16xbf16>, vector<16x128xbf16>, vector<128x128xf32> -> vector<128x128xf32>
    %c0_84 = arith.constant 0 : index
    %c0_85 = arith.constant 0 : index
    %113 = vector.load %arg13[%c0_84, %c0_85] : memref<128x128xf32, #tpu.memory_space<vmem>>, vector<128x128xf32>
    %114 = arith.truncf %113 : vector<128x128xf32> to vector<128x128xbf16>
    %c0_86 = arith.constant 0 : index
    %c0_87 = arith.constant 0 : index
    %115 = vector.load %arg8[%c0_86, %c0_87] : memref<128x128xbf16, #tpu.memory_space<vmem>>, vector<128x128xbf16>
    %cst_88 = arith.constant dense<0.000000e+00> : vector<128x128xf32>
    %116 = tpu.matmul %114, %115, %cst_88 {dimension_numbers = #tpu.dot_dimension_numbers<[1], [0], [0], [1], [0, 0, 1, 1], [], []>} : vector<128x128xbf16>, vector<128x128xbf16>, vector<128x128xf32> -> vector<128x128xf32>
    %117 = arith.addf %112, %116 : vector<128x128xf32>
    %c0_89 = arith.constant 0 : index
    %c0_90 = arith.constant 0 : index
    %118 = vector.load %arg9[%c0_89, %c0_90] : memref<128x128xf32, #tpu.memory_space<vmem>>, vector<128x128xf32>
    tpu.vector_store %arg9[%c0_89, %c0_90], %117 {strides = array<i32>} : memref<128x128xf32, #tpu.memory_space<vmem>>, vector<128x128xf32>,
    return
  }
  func.func @transform_0(%arg0: i32) -> (i32, i32) {
    %c0_i32 = arith.constant 0 : i32
    %c0_i32_0 = arith.constant 0 : i32
    return %arg0, %c0_i32 : i32, i32
  }
  func.func @transform_1(%arg0: i32) -> (i32, i32) {
    %c0_i32 = arith.constant 0 : i32
    %c0_i32_0 = arith.constant 0 : i32
    return %arg0, %c0_i32 : i32, i32
  }
  func.func @transform_2(%arg0: i32) -> (i32, i32) {
    %c0_i32 = arith.constant 0 : i32
    %c0_i32_0 = arith.constant 0 : i32
    return %arg0, %c0_i32 : i32, i32
  }
  func.func @transform_3(%arg0: i32) -> (i32, i32) {
    %c0_i32 = arith.constant 0 : i32
    %c0_i32_0 = arith.constant 0 : i32
    %c0_i32_1 = arith.constant 0 : i32
    return %c0_i32, %c0_i32_0 : i32, i32
  }
  func.func @transform_4(%arg0: i32) -> (i32, i32) {
    %c0_i32 = arith.constant 0 : i32
    %c0_i32_0 = arith.constant 0 : i32
    %c0_i32_1 = arith.constant 0 : i32
    return %c0_i32, %c0_i32_0 : i32, i32
  }
  func.func @transform_5(%arg0: i32) -> (i32, i32) {
    %c0_i32 = arith.constant 0 : i32
    %c0_i32_0 = arith.constant 0 : i32
    %c0_i32_1 = arith.constant 0 : i32
    return %c0_i32, %c0_i32_0 : i32, i32
  }
  func.func @transform_6(%arg0: i32) -> (i32, i32) {
    %c0_i32 = arith.constant 0 : i32
    %c0_i32_0 = arith.constant 0 : i32
    %c0_i32_1 = arith.constant 0 : i32
    return %c0_i32, %c0_i32_0 : i32, i32
  }
  func.func @transform_7(%arg0: i32) -> (i32, i32) {
    %c0_i32 = arith.constant 0 : i32
    %c0_i32_0 = arith.constant 0 : i32
    %c0_i32_1 = arith.constant 0 : i32
    return %c0_i32, %c0_i32_0 : i32, i32
  }
  func.func @transform_8(%arg0: i32) -> (i32, i32) {
    %c0_i32 = arith.constant 0 : i32
    %c0_i32_0 = arith.constant 0 : i32
    return %arg0, %c0_i32 : i32, i32
  }
}

</mosaic_0001>

<bundles_post_ra>
// kernel: tpu_custom_call.1
= control target key start
LH: loop header
LB: loop body
LE: loop exit
PB: predicated region body
PF: predicated region fallthrough
CT: control target
= control target key end

     0   :  { %v3668_v2 = vmov 0.0|0.0   ;;  %vm214_vm0 = vcmask 130048   ;;  %s5105_s0 = inlined_call_operand.vmem [shape: bf16[384,16], index: 0, kind: input, shape index: {}]   ;;  %s5106_s1 = inlined_call_operand.vmem [shape: bf16[128,16], index: 1, kind: input, shape index: {}]   ;;  %s5107_s2 = inlined_call_operand.vmem [shape: s32[128,1], index: 2, kind: input, shape index: {}]   ;;  %s5108_s3 = inlined_call_operand.vmem [shape: bf16[16,128], index: 3, kind: input, shape index: {}]   ;;  %s5109_s4 = inlined_call_operand.vmem [shape: bf16[128,128], index: 4, kind: input, shape index: {}]   ;;  %s5110_s5 = inlined_call_operand.vmem [shape: f32[1,128], index: 5, kind: input, shape index: {}]   ;;  %s5111_s6 = inlined_call_operand.vmem [shape: bf16[16,128], index: 6, kind: input, shape index: {}]   ;;  %s5112_s7 = inlined_call_operand.vmem [shape: bf16[128,128], index: 7, kind: input, shape index: {}]   ;;  %s5113_s8 = inlined_call_operand.hbm [shape: f32[128,128], index: 8, kind: output, shape index: {}]  }
   0x1   :  { %v3386_v0 = vld [vmem:[%s5109_s4 + $0x38] sm:$0xff]   ;;  %v3387_v1 = vld [vmem:[%s5109_s4 + $0x30] sm:$0xff]   ;;  %3243 = vmatprep.mubr.bf16.mxu1 %v3668_v2  ;;  %v3388_v3 = vld [vmem:[%s5109_s4 + $0x28] sm:$0xff]  }
   0x2   :  { %3227 = vmatprep.subr.bf16.mxu1 %v3386_v0  ;;  %v3391_v4 = vld [vmem:[%s5108_s3] sm:$0xff]   ;;  %v3394_v7 = vld [vmem:[%s5105_s0 + $0x8] sm:$0xff]   ;;  %v3397_v8 = vld [vmem:[%s5105_s0 + $0x10] sm:$0xff]  }
   0x3   :  { %3228 = vmatpush3.bf16.msra.mxu1 %v3386_v0  ;;  %v3389_v5 = vld [vmem:[%s5109_s4 + $0x20] sm:$0xff]   ;;  %3177 = vmatprep.subr.bf16.mxu0 %v3391_v4  ;;  %v3390_v9 = vld [vmem:[%s5109_s4 + $0x18] sm:$0xff]   ;;  %v3392_v10 = vld [vmem:[%s5109_s4 + $0x10] sm:$0xff]  }
   0x4   :  { %3229 = vmatprep.subr.bf16.mxu1 %v3387_v1  ;;  %v3393_v6 = vld [vmem:[%s5105_s0] sm:$0xff]   ;;  %3178 = vmatpush3.bf16.msra.mxu0 %v3391_v4  ;;  %v3398_v11 = vld [vmem:[%s5105_s0 + $0x18] sm:$0xff]   ;;  %v3395_v13 = vld [vmem:[%s5109_s4 + $0x8] sm:$0xff]  }
   0x5   :  { %3179 = vmatprep.mubr.msk.bf16.mxu0 %vm214_vm0, %v3393_v6  ;;  %v3399_v12 = vld [vmem:[%s5105_s0 + $0x20] sm:$0xff]   ;;  %v3400_v14 = vld [vmem:[%s5105_s0 + $0x28] sm:$0xff]   ;;  %v3401_v16 = vld [vmem:[%s5105_s0 + $0x30] sm:$0xff]  }
   0x6   :  { %v3396_v15 = vld [vmem:[%s5109_s4] sm:$0xff]   ;;  %v3402_v17 = vld [vmem:[%s5105_s0 + $0x38] sm:$0xff]  }
   0x7   :  { %3230 = vmatpush3.bf16.msra.mxu1 %v3387_v1  ;;  %3180 = vmatmul.mubr.msk.bf16.vlgmr.msra.gmra.mxu0 %vm214_vm0, %v3394_v7 }
   0x8   :  { %3231 = vmatprep.subr.bf16.mxu1 %v3388_v3  ;;  %3183 = vmatprep.mubr.msk.bf16.mxu0 %vm214_vm0, %v3397_v8 }
   0xb   :  { %3232 = vmatpush3.bf16.msra.mxu1 %v3388_v3 }
   0xc   :  { %3233 = vmatprep.subr.bf16.mxu1 %v3389_v5 }
   0xf   :  { %3234 = vmatpush3.bf16.msra.mxu1 %v3389_v5  ;;  %3184 = vmatmul.mubr.msk.bf16.gmra.mxu0 %vm214_vm0, %v3398_v11 }
  0x10   :  { %3235 = vmatprep.subr.bf16.mxu1 %v3390_v9  ;;  %3187 = vmatprep.mubr.msk.bf16.mxu0 %vm214_vm0, %v3399_v12 }
  0x13   :  { %3236 = vmatpush3.bf16.msra.mxu1 %v3390_v9 }
  0x14   :  { %3237 = vmatprep.subr.bf16.mxu1 %v3392_v10 }
  0x17   :  { %3238 = vmatpush3.bf16.msra.mxu1 %v3392_v10  ;;  %3188 = vmatmul.mubr.msk.bf16.gmra.mxu0 %vm214_vm0, %v3400_v14 }
  0x18   :  { %3239 = vmatprep.subr.bf16.mxu1 %v3395_v13  ;;  %3191 = vmatprep.mubr.msk.bf16.mxu0 %vm214_vm0, %v3401_v16 }
  0x1b   :  { %3240 = vmatpush3.bf16.msra.mxu1 %v3395_v13 }
  0x1c   :  { %3241 = vmatprep.subr.bf16.mxu1 %v3396_v15 }
  0x1f   :  { %3242 = vmatpush3.bf16.msra.mxu1 %v3396_v15  ;;  %3192 = vmatmul.mubr.msk.bf16.gmra.mxu0 %vm214_vm0, %v3402_v17 }
  0x22   :  { %3244 = vmatmul.mubr.bf16.vlgmr.msra.gmra.mxu1 %v3668_v2 }
  0x23   :  { %3247 = vmatprep.mubr.bf16.mxu1 %v3668_v2 }
  0x2a   :  { %3248 = vmatmul.mubr.bf16.gmra.mxu1 %v3668_v2 }
  0x2b   :  { %3251 = vmatprep.mubr.bf16.mxu1 %v3668_v2 }
  0x2c   :  { %13 = vsyncpa [#allocation7], 0  ;;  %v608_v18 = vlaneseq  ;;  %v3784_v21 = vld [vmem:[%s5110_s5] ss:$0 sm:$0xff]  ;;  %v3669_v26 = vmov 0.5   ;;  %v3403_v57 = vld [vmem:[%s5109_s4 + $0x38] sm:$0xff]  }
  0x2d   :  { %3259 = vmatprep.subr.bf16.mxu1 %v3403_v57  ;;  %s3670_s19 = smov 96   ;;  %v3404_v5 = vld [vmem:[%s5109_s4 + $0x30] sm:$0xff]   ;;  %s3671_s22 = smov 64   ;;  %v3405_v11 = vld [vmem:[%s5109_s4 + $0x28] sm:$0xff]   ;;  %v3406_v16 = vld [vmem:[%s5109_s4 + $0x20] sm:$0xff]  }
  0x2e   :  { %v609_v19 = vand.u32 127, %v608_v18  ;;  %3260 = vmatpush3.bf16.msra.mxu1 %v3403_v57  ;;  %s3672_s25 = smov 32   ;;  %v3407_v24 = vld [vmem:[%s5109_s4 + $0x18] sm:$0xff]   ;;  %v3412_v57 = vld [vmem:[%s5105_s0 + $0x48] sm:$0xff]  }
  0x2f   :  { %3261 = vmatprep.subr.bf16.mxu1 %v3404_v5 }
  0x30   :  { %vm610_vm1 = vcmp.ge.s32.totalorder %v609_v19, 64  ;;  %vm611_vm2 = vcmp.lt.s32.totalorder %v609_v19, 96 }
  0x31   :  { %vm3787_vm3 = vmand %vm610_vm1, %vm611_vm2 }
  0x32   :  { %3252 = vmatmul.mubr.bf16.gmra.mxu1 %v3668_v2  ;;  %v3793_v27 = vsel %vm3787_vm3, 1.0, %v3669_v26  ;;  %v3806_v54 = vsel %vm3787_vm3, 0.0, %v3669_v26 }
  0x33   :  { %3255 = vmatprep.mubr.bf16.mxu1 %v3668_v2  ;;  %5146 = vst [vmem:[#allocation9_spill] sm:$0xff] %v3793_v27  ;;  %5147 = vst [vmem:[#allocation10_spill] sm:$0xff] %v3806_v54  ;;  %3262 = vmatpush3.bf16.msra.mxu1 %v3404_v5 }
  0x34   :  { %3263 = vmatprep.subr.bf16.mxu1 %v3405_v11 }
  0x37   :  { %3264 = vmatpush3.bf16.msra.mxu1 %v3405_v11 }
  0x38   :  { %3265 = vmatprep.subr.bf16.mxu1 %v3406_v16 }
  0x3a   :  { %3256 = vmatmul.mubr.bf16.gmra.mxu1 %v3668_v2 }
  0x3b   :  { %3266 = vmatpush3.bf16.msra.mxu1 %v3406_v16 }
  0x3c   :  { %3267 = vmatprep.subr.bf16.mxu1 %v3407_v24 }
  0x3f   :  { %3268 = vmatpush3.bf16.msra.mxu1 %v3407_v24 }
  0xc7   :  { %v3181_v20 = vpop.f32.mrf.mxu0 }
  0xc8   :  { %v330_v23 = vadd.f32 %v3181_v20, %v3784_v21 }
  0xc9   :  { %v321_v22 = vpop.f32.mrf.mxu0 }
  0xca   :  { %v322_v29 = vadd.f32 %v3784_v21, %v321_v22 }
  0xcb   :  { %v3182_v25 = vpop.f32.mrf.mxu0 }
  0xcc   :  { %v333_v32 = vadd.f32 %v3182_v25, %v3784_v21 }
  0xcd   :  { %v324_v35 = vpop.f32.mrf.mxu0 }
  0xce   :  { %v325_v42 = vadd.f32 %v3784_v21, %v324_v35 }
  0xcf   :  { %v3185_v39 = vpop.f32.mrf.mxu0 }
  0xd0   :  { %v346_v46 = vadd.f32 %v3185_v39, %v3784_v21 }
  0xd1   :  { %v337_v43 = vpop.f32.mrf.mxu0 }
  0xd2   :  { %v338_v60 = vadd.f32 %v3784_v21, %v337_v43 }
  0xd3   :  { %v3186_v47 = vpop.f32.mrf.mxu0 }
  0xd4   :  { %v349_v50 = vadd.f32 %v3186_v47, %v3784_v21 }
  0xd5   :  { %v340_v59 = vpop.f32.mrf.mxu0 }
  0xd6   :  { %v341_v1 = vadd.f32 %v3784_v21, %v340_v59 }
  0xd7   :  { %v3189_v8 = vpop.f32.mrf.mxu0 }
  0xd8   :  { %v362_v18 = vadd.f32 %v3189_v8, %v3784_v21 }
  0xd9   :  { %v353_v13 = vpop.f32.mrf.mxu0 }
  0xdb   :  { %v3190_v19 = vpop.f32.mrf.mxu0 }
  0xdc   :  { %v365_v22 = vadd.f32 %v3190_v19, %v3784_v21 }
  0xe2   :  { %v3245_v28 = vpop.f32.mrf.mxu1 }
  0xe3   :  { %v834_v30 = vadd.f32 %v3245_v28, %v330_v23 }
  0xe4   :  { %v769_v31 = vpop.f32.mrf.mxu1 }
  0xe5   :  { %v850_v33 = vmul.f32 %v834_v30, %v3793_v27  ;;  %v832_v34 = vadd.f32 %v769_v31, %v322_v29  ;;  %v3408_v31 = vld [vmem:[%s5109_s4 + $0x10] sm:$0xff]  }
  0xe6   :  { %v3246_v36 = vpop.f32.mrf.mxu1  ;;  %3269 = vmatprep.subr.bf16.mxu1 %v3408_v31 }
  0xe7   :  { %3452 = vtanh.f32 %v850_v33  ;;  %v848_v37 = vmul.f32 %v832_v34, %v3793_v27  ;;  %v835_v38 = vadd.f32 %v3246_v36, %v333_v32  ;;  %v356_v33 = vpop.f32.mrf.mxu0  ;;  %v354_v34 = vadd.f32 %v3784_v21, %v353_v13  ;;  %3270 = vmatpush3.bf16.msra.mxu1 %v3408_v31 }
  0xe8   :  { %v772_v41 = vpop.f32.mrf.mxu1 }
  0xe9   :  { %3454 = vtanh.f32 %v848_v37  ;;  %v851_v40 = vmul.f32 %v835_v38, %v3793_v27  ;;  %v833_v45 = vadd.f32 %v772_v41, %v325_v42  ;;  %v3193_v37 = vpop.f32.mrf.mxu0  ;;  %v357_v38 = vadd.f32 %v3784_v21, %v356_v33  ;;  %v3409_v41 = vld [vmem:[%s5109_s4 + $0x8] sm:$0xff]  }
  0xea   :  { %v3249_v44 = vpop.f32.mrf.mxu1  ;;  %3271 = vmatprep.subr.bf16.mxu1 %v3409_v41 }
  0xeb   :  { %3456 = vtanh.f32 %v851_v40  ;;  %v849_v49 = vmul.f32 %v833_v45, %v3793_v27  ;;  %v838_v51 = vadd.f32 %v3249_v44, %v346_v46  ;;  %v369_v46 = vpop.f32.mrf.mxu0  ;;  %3272 = vmatpush3.bf16.msra.mxu1 %v3409_v41 }
  0xec   :  { %v785_v48 = vpop.f32.mrf.mxu1 }
  0xed   :  { %3458 = vtanh.f32 %v849_v49  ;;  %v854_v61 = vmul.f32 %v838_v51, %v3793_v27  ;;  %v836_v7 = vadd.f32 %v785_v48, %v338_v60 }
  0xee   :  { %v3250_v53 = vpop.f32.mrf.mxu1 }
  0xef   :  { %v839_v55 = vadd.f32 %v3250_v53, %v349_v50  ;;  %3460 = vtanh.f32 %v854_v61  ;;  %v852_v12 = vmul.f32 %v836_v7, %v3793_v27  ;;  %v3410_v50 = vld [vmem:[%s5109_s4] sm:$0xff]   ;;  %v370_v7 = vadd.f32 %v3784_v21, %v369_v46 }
  0xf0   :  { %v788_v6 = vpop.f32.mrf.mxu1  ;;  %3273 = vmatprep.subr.bf16.mxu1 %v3410_v50 }
  0xf1   :  { %v855_v2 = vmul.f32 %v839_v55, %v3793_v27  ;;  %v837_v9 = vadd.f32 %v788_v6, %v341_v1  ;;  %v378_v55 = vadd.f32 %v3193_v37, %v3784_v21  ;;  %3274 = vmatpush3.bf16.msra.mxu1 %v3410_v50  ;;  %v3413_v37 = vld [vmem:[%s5105_s0 + $0x50] sm:$0xff]  }
  0xf2   :  { %v3253_v14 = vpop.f32.mrf.mxu1  ;;  %v3417_v50 = vld [vmem:[%s5105_s0 + $0x70] sm:$0xff]  }
  0xf3   :  { %3462 = vtanh.f32 %v855_v2  ;;  %v853_v15 = vmul.f32 %v837_v9, %v3793_v27  ;;  %v842_v25 = vadd.f32 %v3253_v14, %v362_v18 }
  0xf4   :  { %v3453_v52 = vpop.eup %3452  ;;  %3464 = vtanh.f32 %v852_v12  ;;  %v801_v20 = vpop.f32.mrf.mxu1 }
  0xf5   :  { %v882_v56 = vmul.f32 %v3453_v52, %v3793_v27  ;;  %3466 = vtanh.f32 %v853_v15  ;;  %v858_v35 = vmul.f32 %v842_v25, %v3793_v27  ;;  %v840_v43 = vadd.f32 %v801_v20, %v354_v34  ;;  %v3411_v52 = vld [vmem:[%s5105_s0 + $0x40] sm:$0xff]  }
  0xf6   :  { %v3455_v58 = vpop.eup %3454  ;;  %v3254_v28 = vpop.f32.mrf.mxu1  ;;  %3195 = vmatprep.mubr.msk.bf16.mxu0 %vm214_vm0, %v3411_v52 }
  0xf7   :  { %v3815_v62 = vadd.f32 %v882_v56, %v3806_v54  ;;  %v880_v63 = vmul.f32 %v3455_v58, %v3793_v27  ;;  %v843_v29 = vadd.f32 %v3254_v28, %v365_v22  ;;  %3468 = vtanh.f32 %v858_v35  ;;  %v3194_v58 = vpop.f32.mrf.mxu0  ;;  %3196 = vmatmul.mubr.msk.bf16.gmra.mxu0 %vm214_vm0, %v3412_v57 }
  0xf8   :  { %v3457_v0 = vpop.eup %3456  ;;  %v804_v42 = vpop.f32.mrf.mxu1  ;;  %v856_v53 = vmul.f32 %v840_v43, %v3793_v27  ;;  %v381_v61 = vadd.f32 %v3194_v58, %v3784_v21  ;;  %3199 = vmatprep.mubr.msk.bf16.mxu0 %vm214_vm0, %v3413_v37 }
  0xf9   :  { %916 = vrot.lane.b32.xlu0 %v3815_v62, %s3670_s19  ;;  %v3823_v3 = vadd.f32 %v880_v63, %v3806_v54  ;;  %v883_v4 = vmul.f32 %v3457_v0, %v3793_v27  ;;  %v859_v39 = vmul.f32 %v843_v29, %v3793_v27  ;;  %v841_v48 = vadd.f32 %v804_v42, %v357_v38  ;;  %v372_v6 = vpop.f32.mrf.mxu0 }
  0xfa   :  { %v3459_v17 = vpop.eup %3458  ;;  %v3257_v47 = vpop.f32.mrf.mxu1  ;;  %v373_v11 = vadd.f32 %v3784_v21, %v372_v6 }
  0xfb   :  { %944 = vrot.lane.b32.xlu1 %v3823_v3, %s3671_s22  ;;  %v3834_v10 = vadd.f32 %v883_v4, %v3806_v54  ;;  %v881_v23 = vmul.f32 %v3459_v17, %v3793_v27  ;;  %3470 = vtanh.f32 %v859_v39  ;;  %v857_v60 = vmul.f32 %v841_v48, %v3793_v27  ;;  %v3414_v39 = vld [vmem:[%s5105_s0 + $0x58] sm:$0xff]   ;;  %v3416_v48 = vld [vmem:[%s5105_s0 + $0x68] sm:$0xff]  }
  0xfc   :  { %v3461_v26 = vpop.eup %3460  ;;  %v817_v59 = vpop.f32.mrf.mxu1  ;;  %3472 = vtanh.f32 %v856_v53  ;;  %v846_v0 = vadd.f32 %v3257_v47, %v378_v55  ;;  %v3415_v47 = vld [vmem:[%s5105_s0 + $0x60] sm:$0xff]  }
  0xfd   :  { %948 = vrot.lane.b32.xlu0 %v3815_v62, %s3671_s22  ;;  %v3863_v30 = vadd.f32 %v881_v23, %v3806_v54  ;;  %v886_v36 = vmul.f32 %v3461_v26, %v3793_v27  ;;  %3474 = vtanh.f32 %v857_v60  ;;  %v844_v15 = vadd.f32 %v817_v59, %v370_v7 }
  0xfe   :  { %v3258_v2 = vpop.f32.mrf.mxu1  ;;  %v862_v8 = vmul.f32 %v846_v0, %v3793_v27 }
  0xff   :  { %918 = vrot.lane.b32.xlu1 %v3834_v10, %s3670_s19  ;;  %v3884_v44 = vadd.f32 %v886_v36, %v3806_v54  ;;  %v847_v4 = vadd.f32 %v3258_v2, %v381_v61  ;;  %v860_v19 = vmul.f32 %v844_v15, %v3793_v27  ;;  %3200 = vmatmul.mubr.msk.bf16.gmra.mxu0 %vm214_vm0, %v3414_v39 }
 0x100   :  { %v3463_v32 = vpop.eup %3462  ;;  %v820_v14 = vpop.f32.mrf.mxu1  ;;  %3476 = vtanh.f32 %v862_v8  ;;  %3203 = vmatprep.mubr.msk.bf16.mxu0 %vm214_vm0, %v3415_v47 }
 0x101   :  { %980 = vrot.lane.b32.xlu0 %v3815_v62, %s3672_s25  ;;  %v887_v40 = vmul.f32 %v3463_v32, %v3793_v27  ;;  %v3465_v45 = vpop.eup %3464  ;;  %v863_v12 = vmul.f32 %v847_v4, %v3793_v27  ;;  %v845_v17 = vadd.f32 %v820_v14, %v373_v11 }
 0x102   :  { %v3467_v51 = vpop.eup %3466  ;;  %v884_v56 = vmul.f32 %v3465_v45, %v3793_v27 }
 0x103   :  { %950 = vrot.lane.b32.xlu1 %v3834_v10, %s3671_s22  ;;  %v3889_v49 = vadd.f32 %v887_v40, %v3806_v54  ;;  %v885_v63 = vmul.f32 %v3467_v51, %v3793_v27  ;;  %3478 = vtanh.f32 %v863_v12  ;;  %v861_v23 = vmul.f32 %v845_v17, %v3793_v27  ;;  %v3418_v51 = vld [vmem:[%s5105_s0 + $0x78] sm:$0xff]  }
 0x104   :  { %v3915_v1 = vadd.f32 %v884_v56, %v3806_v54  ;;  %v3469_v9 = vpop.eup %3468  ;;  %3480 = vtanh.f32 %v860_v19 }
 0x105   :  { %912 = vrot.lane.b32.xlu0 %v3823_v3, %s3670_s19  ;;  %v3920_v5 = vadd.f32 %v885_v63, %v3806_v54  ;;  %v890_v16 = vmul.f32 %v3469_v9, %v3793_v27  ;;  %3482 = vtanh.f32 %v861_v23 }
 0x107   :  { %982 = vrot.lane.b32.xlu1 %v3834_v10, %s3672_s25  ;;  %v3940_v20 = vadd.f32 %v890_v16, %v3806_v54  ;;  %3204 = vmatmul.mubr.msk.bf16.gmra.mxu0 %vm214_vm0, %v3416_v48 }
 0x108   :  { %v3471_v13 = vpop.eup %3470  ;;  %3207 = vmatprep.mubr.msk.bf16.mxu0 %vm214_vm0, %v3417_v50 }
 0x109   :  { %976 = vrot.lane.b32.xlu0 %v3823_v3, %s3672_s25  ;;  %v891_v18 = vmul.f32 %v3471_v13, %v3793_v27  ;;  %v3473_v22 = vpop.eup %3472 }
 0x10a   :  { %v3475_v25 = vpop.eup %3474  ;;  %v888_v26 = vmul.f32 %v3473_v22, %v3793_v27 }
 0x10b   :  { %946 = vrot.lane.b32.xlu1 %v3863_v30, %s3671_s22  ;;  %v3946_v24 = vadd.f32 %v891_v18, %v3806_v54  ;;  %v889_v28 = vmul.f32 %v3475_v25, %v3793_v27 }
 0x10c   :  { %v3957_v29 = vadd.f32 %v888_v26, %v3806_v54 }
 0x10d   :  { %914 = vrot.lane.b32.xlu0 %v3863_v30, %s3670_s19  ;;  %v3477_v31 = vpop.eup %3476  ;;  %v3962_v32 = vadd.f32 %v889_v28, %v3806_v54 }
 0x10e   :  { %v894_v34 = vmul.f32 %v3477_v31, %v3793_v27 }
 0x10f   :  { %978 = vrot.lane.b32.xlu1 %v3863_v30, %s3672_s25  ;;  %3208 = vmatmul.mubr.msk.bf16.gmra.mxu0 %vm214_vm0, %v3418_v51 }
 0x110   :  { %v3479_v33 = vpop.eup %3478  ;;  %v3973_v36 = vadd.f32 %v894_v34, %v3806_v54 }
 0x111   :  { %924 = vrot.lane.b32.xlu0 %v3884_v44, %s3670_s19  ;;  %v895_v35 = vmul.f32 %v3479_v33, %v3793_v27  ;;  %v3481_v38 = vpop.eup %3480 }
 0x112   :  { %v3483_v41 = vpop.eup %3482  ;;  %v892_v42 = vmul.f32 %v3481_v38, %v3793_v27 }
 0x113   :  { %926 = vrot.lane.b32.xlu1 %v3889_v49, %s3670_s19  ;;  %v3984_v40 = vadd.f32 %v895_v35, %v3806_v54  ;;  %v893_v43 = vmul.f32 %v3483_v41, %v3793_v27 }
 0x114   :  { %v3997_v45 = vadd.f32 %v892_v42, %v3806_v54 }
 0x115   :  { %956 = vrot.lane.b32.xlu0 %v3884_v44, %s3671_s22  ;;  %v4002_v46 = vadd.f32 %v893_v43, %v3806_v54 }
 0x117   :  { %958 = vrot.lane.b32.xlu1 %v3889_v49, %s3671_s22 }
 0x119   :  { %920 = vrot.lane.b32.xlu0 %v3915_v1, %s3670_s19 }
 0x11b   :  { %922 = vrot.lane.b32.xlu1 %v3920_v5, %s3670_s19 }
 0x11d   :  { %952 = vrot.lane.b32.xlu0 %v3915_v1, %s3671_s22 }
 0x11f   :  { %954 = vrot.lane.b32.xlu1 %v3920_v5, %s3671_s22 }
 0x121   :  { %984 = vrot.lane.b32.xlu0 %v3915_v1, %s3672_s25 }
 0x123   :  { %986 = vrot.lane.b32.xlu1 %v3920_v5, %s3672_s25 }
 0x125   :  { %932 = vrot.lane.b32.xlu0 %v3940_v20, %s3670_s19 }
 0x127   :  { %934 = vrot.lane.b32.xlu1 %v3946_v24, %s3670_s19 }
 0x129   :  { %964 = vrot.lane.b32.xlu0 %v3940_v20, %s3671_s22 }
 0x12b   :  { %966 = vrot.lane.b32.xlu1 %v3946_v24, %s3671_s22 }
 0x12d   :  { %928 = vrot.lane.b32.xlu0 %v3957_v29, %s3670_s19 }
 0x12f   :  { %930 = vrot.lane.b32.xlu1 %v3962_v32, %s3670_s19 }
 0x131   :  { %960 = vrot.lane.b32.xlu0 %v3957_v29, %s3671_s22 }
 0x133   :  { %962 = vrot.lane.b32.xlu1 %v3962_v32, %s3671_s22 }
 0x135   :  { %940 = vrot.lane.b32.xlu0 %v3973_v36, %s3670_s19 }
 0x137   :  { %942 = vrot.lane.b32.xlu1 %v3984_v40, %s3670_s19 }
 0x139   :  { %972 = vrot.lane.b32.xlu0 %v3973_v36, %s3671_s22 }
 0x13b   :  { %974 = vrot.lane.b32.xlu1 %v3984_v40, %s3671_s22 }
 0x13d   :  { %936 = vrot.lane.b32.xlu0 %v3997_v45, %s3670_s19 }
 0x13f   :  { %938 = vrot.lane.b32.xlu1 %v4002_v46, %s3670_s19 }
 0x141   :  { %968 = vrot.lane.b32.xlu0 %v3997_v45, %s3671_s22 }
 0x143   :  { %970 = vrot.lane.b32.xlu1 %v4002_v46, %s3671_s22 }
 0x145   :  { %988 = vrot.lane.b32.xlu0 %v3884_v44, %s3672_s25 }
 0x147   :  { %990 = vrot.lane.b32.xlu1 %v3889_v49, %s3672_s25 }
 0x149   :  { %992 = vrot.lane.b32.xlu0 %v3957_v29, %s3672_s25 }
 0x14b   :  { %994 = vrot.lane.b32.xlu1 %v3962_v32, %s3672_s25 }
 0x14d   :  { %996 = vrot.lane.b32.xlu0 %v3940_v20, %s3672_s25 }
 0x14f   :  { %998 = vrot.lane.b32.xlu1 %v3946_v24, %s3672_s25 }
 0x151   :  { %1000 = vrot.lane.b32.xlu0 %v3997_v45, %s3672_s25 }
 0x153   :  { %1002 = vrot.lane.b32.xlu1 %v4002_v46, %s3672_s25 }
 0x155   :  { %1004 = vrot.lane.b32.xlu0 %v3973_v36, %s3672_s25 }
 0x157   :  { %1006 = vrot.lane.b32.xlu1 %v3984_v40, %s3672_s25 }
 0x16b   :  { %v917_v52 = vpop.permute.xlu0 %916 }
 0x16c   :  { %v1026_v8 = vmul.f32 0.0, %v917_v52 }
 0x16d   :  { %v945_v53 = vpop.permute.xlu1 %944 }
 0x16e   :  { %v1040_v2 = vmul.f32 %v945_v53, %v3823_v3 }
 0x16f   :  { %v949_v55 = vpop.permute.xlu0 %948 }
 0x170   :  { %v1042_v4 = vmul.f32 %v949_v55, %v3815_v62 }
 0x171   :  { %v919_v56 = vpop.permute.xlu1 %918 }
 0x172   :  { %v1027_v0 = vmul.f32 0.0, %v919_v56  ;;  %v4053_v12 = vadd.f32 %v1042_v4, %v1026_v8 }
 0x173   :  { %v981_v57 = vpop.permute.xlu0 %980 }
 0x175   :  { %v951_v58 = vpop.permute.xlu1 %950 }
 0x176   :  { %v1043_v60 = vmul.f32 %v951_v58, %v3834_v10 }
 0x177   :  { %v913_v59 = vpop.permute.xlu0 %912 }
 0x178   :  { %v1024_v61 = vmul.f32 0.0, %v913_v59  ;;  %v4049_v7 = vadd.f32 %v1043_v60, %v1027_v0 }
 0x179   :  { %v983_v63 = vpop.permute.xlu1 %982 }
 0x17a   :  { %v4051_v9 = vadd.f32 %v1040_v2, %v1024_v61  ;;  %3484 = vtanh.f32 %v4049_v7 }
 0x17b   :  { %v977_v6 = vpop.permute.xlu0 %976 }
 0x17c   :  { %3486 = vtanh.f32 %v4051_v9 }
 0x17d   :  { %v947_v11 = vpop.permute.xlu1 %946  ;;  %3488 = vtanh.f32 %v4053_v12 }
 0x17e   :  { %v1041_v10 = vmul.f32 %v947_v11, %v3863_v30 }
 0x17f   :  { %v915_v13 = vpop.permute.xlu0 %914 }
 0x180   :  { %v1025_v14 = vmul.f32 0.0, %v915_v13 }
 0x181   :  { %v979_v3 = vpop.permute.xlu1 %978 }
 0x182   :  { %v4058_v15 = vadd.f32 %v1041_v10, %v1025_v14 }
 0x183   :  { %v925_v62 = vpop.permute.xlu0 %924 }
 0x184   :  { %3490 = vtanh.f32 %v4058_v15  ;;  %v1030_v4 = vmul.f32 0.0, %v925_v62 }
 0x185   :  { %v927_v16 = vpop.permute.xlu1 %926 }
 0x186   :  { %v1031_v8 = vmul.f32 0.0, %v927_v16 }
 0x187   :  { %v957_v17 = vpop.permute.xlu0 %956  ;;  %v3485_v22 = vpop.eup %3484 }
 0x188   :  { %v4063_v34 = vmul.f32 %v3485_v22, %v983_v63  ;;  %v1046_v60 = vmul.f32 %v957_v17, %v3884_v44 }
 0x189   :  { %v959_v18 = vpop.permute.xlu1 %958  ;;  %v3487_v25 = vpop.eup %3486 }
 0x18a   :  { %v3489_v30 = vpop.eup %3488  ;;  %v4065_v35 = vmul.f32 %v3487_v25, %v977_v6  ;;  %v1047_v63 = vmul.f32 %v959_v18, %v3889_v49  ;;  %v4090_v13 = vadd.f32 %v1046_v60, %v1030_v4 }
 0x18b   :  { %v921_v19 = vpop.permute.xlu0 %920  ;;  %v4072_v43 = vmul.f32 %v3489_v30, %v981_v57 }
 0x18c   :  { %v1028_v28 = vmul.f32 0.0, %v921_v19 }
 0x18d   :  { %v923_v23 = vpop.permute.xlu1 %922  ;;  %v1313_v50 = vpack.c.bf16 %v4063_v34, %v4072_v43 }
 0x18e   :  { %v1029_v39 = vmul.f32 0.0, %v923_v23 }
 0x18f   :  { %v953_v26 = vpop.permute.xlu0 %952 }
 0x190   :  { %v1044_v31 = vmul.f32 %v953_v26, %v3915_v1 }
 0x191   :  { %v3491_v33 = vpop.eup %3490  ;;  %v955_v37 = vpop.permute.xlu1 %954 }
 0x192   :  { %v4067_v38 = vmul.f32 %v3491_v33, %v979_v3  ;;  %v4069_v41 = vadd.f32 %v1044_v31, %v1028_v28  ;;  %v1045_v42 = vmul.f32 %v955_v37, %v3920_v5  ;;  %v4093_v3 = vadd.f32 %v1047_v63, %v1031_v8 }
 0x193   :  { %v985_v47 = vpop.permute.xlu0 %984 }
 0x194   :  { %v1312_v48 = vpack.c.bf16 %v4067_v38, %v4065_v35  ;;  %3492 = vtanh.f32 %v4069_v41  ;;  %v4077_v1 = vadd.f32 %v1045_v42, %v1029_v39 }
 0x195   :  { %v987_v51 = vpop.permute.xlu1 %986 }
 0x196   :  { %3494 = vtanh.f32 %v4077_v1  ;;  %3275 = vmatprep.mubr.bf16.mxu1 %v1312_v48 }
 0x197   :  { %3276 = vmatmul.mubr.bf16.vlgmr.msra.gmra.mxu1 %v1313_v50  ;;  %v933_v52 = vpop.permute.xlu0 %932  ;;  %3496 = vtanh.f32 %v4090_v13 }
 0x198   :  { %3498 = vtanh.f32 %v4093_v3  ;;  %v1034_v23 = vmul.f32 0.0, %v933_v52 }
 0x199   :  { %v935_v5 = vpop.permute.xlu1 %934 }
 0x19b   :  { %v965_v53 = vpop.permute.xlu0 %964 }
 0x19c   :  { %v1050_v62 = vmul.f32 %v965_v53, %v3940_v20 }
 0x19d   :  { %v967_v55 = vpop.permute.xlu1 %966 }
 0x19e   :  { %v4104_v26 = vadd.f32 %v1050_v62, %v1034_v23 }
 0x19f   :  { %v929_v56 = vpop.permute.xlu0 %928 }
 0x1a0   :  { %v1032_v49 = vmul.f32 0.0, %v929_v56 }
 0x1a1   :  { %v3493_v57 = vpop.eup %3492  ;;  %v931_v58 = vpop.permute.xlu1 %930 }
 0x1a2   :  { %v4084_v0 = vmul.f32 %v3493_v57, %v985_v47  ;;  %v1033_v18 = vmul.f32 0.0, %v931_v58 }
 0x1a3   :  { %v3495_v59 = vpop.eup %3494  ;;  %v961_v61 = vpop.permute.xlu0 %960 }
 0x1a4   :  { %v4086_v2 = vmul.f32 %v3495_v59, %v987_v51  ;;  %v1048_v10 = vmul.f32 %v961_v61, %v3957_v29  ;;  %v1051_v29 = vmul.f32 %v967_v55, %v3946_v24 }
 0x1a5   :  { %v963_v6 = vpop.permute.xlu1 %962 }
 0x1a6   :  { %v1314_v11 = vpack.c.bf16 %v4086_v2, %v4084_v0  ;;  %v1049_v44 = vmul.f32 %v963_v6, %v3962_v32  ;;  %v4098_v16 = vadd.f32 %v1048_v10, %v1032_v49  ;;  %v1035_v32 = vmul.f32 0.0, %v935_v5 }
 0x1a7   :  { %v941_v14 = vpop.permute.xlu0 %940 }
 0x1a8   :  { %3279 = vmatprep.mubr.bf16.mxu1 %v1314_v11  ;;  %v4102_v22 = vadd.f32 %v1049_v44, %v1033_v18  ;;  %3500 = vtanh.f32 %v4098_v16  ;;  %v4107_v28 = vadd.f32 %v1051_v29, %v1035_v32  ;;  %v1038_v42 = vmul.f32 0.0, %v941_v14 }
 0x1a9   :  { %v943_v17 = vpop.permute.xlu1 %942 }
 0x1aa   :  { %3502 = vtanh.f32 %v4102_v22  ;;  %v1039_v48 = vmul.f32 0.0, %v943_v17 }
 0x1ab   :  { %v973_v19 = vpop.permute.xlu0 %972  ;;  %3504 = vtanh.f32 %v4104_v26 }
 0x1ac   :  { %v1054_v31 = vmul.f32 %v973_v19, %v3973_v36  ;;  %3506 = vtanh.f32 %v4107_v28  ;;  %v3497_v36 = vpop.eup %3496 }
 0x1ad   :  { %v975_v25 = vpop.permute.xlu1 %974  ;;  %v3499_v56 = vpop.eup %3498 }
 0x1ae   :  { %v1055_v33 = vmul.f32 %v975_v25, %v3984_v40  ;;  %v4118_v5 = vadd.f32 %v1054_v31, %v1038_v42 }
 0x1af   :  { %v937_v30 = vpop.permute.xlu0 %936 }
 0x1b0   :  { %v1036_v37 = vmul.f32 0.0, %v937_v30  ;;  %v4120_v55 = vadd.f32 %v1055_v33, %v1039_v48 }
 0x1b1   :  { %v939_v20 = vpop.permute.xlu1 %938 }
 0x1b2   :  { %v1037_v50 = vmul.f32 0.0, %v939_v20 }
 0x1b3   :  { %v969_v24 = vpop.permute.xlu0 %968 }
 0x1b4   :  { %v1052_v39 = vmul.f32 %v969_v24, %v3997_v45 }
 0x1b5   :  { %v971_v47 = vpop.permute.xlu1 %970  ;;  %v3501_v59 = vpop.eup %3500 }
 0x1b6   :  { %v4115_v51 = vadd.f32 %v1052_v39, %v1036_v37  ;;  %v1053_v52 = vmul.f32 %v971_v47, %v4002_v46 }
 0x1b7   :  { %v989_v53 = vpop.permute.xlu0 %988  ;;  %v3503_v61 = vpop.eup %3502 }
 0x1b8   :  { %3508 = vtanh.f32 %v4115_v51  ;;  %v4123_v40 = vadd.f32 %v1053_v52, %v1037_v50  ;;  %v4126_v57 = vmul.f32 %v3497_v36, %v989_v53  ;;  %v3505_v11 = vpop.eup %3504  ;;  %v3197_v47 = vpop.f32.mrf.mxu0 }
 0x1b9   :  { %v991_v45 = vpop.permute.xlu1 %990  ;;  %v3507_v14 = vpop.eup %3506  ;;  %v394_v50 = vadd.f32 %v3197_v47, %v3784_v21 }
 0x1ba   :  { %3510 = vtanh.f32 %v4123_v40  ;;  %v4128_v58 = vmul.f32 %v3499_v56, %v991_v45  ;;  %v385_v48 = vpop.f32.mrf.mxu0 }
 0x1bb   :  { %3512 = vtanh.f32 %v4118_v5  ;;  %v993_v46 = vpop.permute.xlu0 %992  ;;  %v386_v36 = vadd.f32 %v3784_v21, %v385_v48 }
 0x1bc   :  { %3514 = vtanh.f32 %v4120_v55  ;;  %v1315_v60 = vpack.c.bf16 %v4128_v58, %v4126_v57  ;;  %v4134_v4 = vmul.f32 %v3501_v59, %v993_v46  ;;  %v3198_v52 = vpop.f32.mrf.mxu0 }
 0x1bd   :  { %v995_v63 = vpop.permute.xlu1 %994  ;;  %v397_v45 = vadd.f32 %v3198_v52, %v3784_v21 }
 0x1be   :  { %v4136_v6 = vmul.f32 %v3503_v61, %v995_v63  ;;  %3280 = vmatmul.mubr.bf16.gmra.mxu1 %v1315_v60  ;;  %v388_v59 = vpop.f32.mrf.mxu0  ;;  %v5137_v61 = vmov 0  }
 0x1bf   :  { %v997_v8 = vpop.permute.xlu0 %996  ;;  %3384 = vset.pattern.permute.xlu0 %v5137_v61  ;;  %3385 = vset.pattern.permute.xlu1 %v5137_v61 }
 0x1c0   :  { %v1316_v10 = vpack.c.bf16 %v4136_v6, %v4134_v4  ;;  %v4140_v49 = vmul.f32 %v3505_v11, %v997_v8  ;;  %v389_v11 = vadd.f32 %v3784_v21, %v388_v59  ;;  %v3201_v48 = vpop.f32.mrf.mxu0 }
 0x1c1   :  { %v999_v44 = vpop.permute.xlu1 %998 }
 0x1c2   :  { %5148 = vst [vmem:[#allocation11_spill] sm:$0xff] %v4140_v49  ;;  %v4142_v17 = vmul.f32 %v3507_v14, %v999_v44  ;;  %3283 = vmatprep.mubr.bf16.mxu1 %v1316_v10 }
 0x1c3   :  { %v1001_v18 = vpop.permute.xlu0 %1000 }
 0x1c4   :  { %v1317_v62 = vpack.c.bf16 %v4142_v17, %v4140_v49 }
 0x1c5   :  { %v3509_v19 = vpop.eup %3508  ;;  %v1003_v29 = vpop.permute.xlu1 %1002 }
 0x1c6   :  { %3284 = vmatmul.mubr.bf16.gmra.mxu1 %v1317_v62  ;;  %v4146_v30 = vmul.f32 %v3509_v19, %v1001_v18 }
 0x1c7   :  { %v3511_v23 = vpop.eup %3510  ;;  %v1005_v25 = vpop.permute.xlu0 %1004 }
 0x1c8   :  { %v3513_v32 = vpop.eup %3512  ;;  %5149 = vst [vmem:[#allocation12_spill] sm:$0xff] %v4146_v30  ;;  %v4148_v20 = vmul.f32 %v3511_v23, %v1003_v29 }
 0x1c9   :  { %v3515_v31 = vpop.eup %3514  ;;  %v1007_v24 = vpop.permute.xlu1 %1006  ;;  %v4152_v37 = vmul.f32 %v3513_v32, %v1005_v25  ;;  %v3419_v25 = vld [vmem:[%s5109_s4 + $0x38] sm:$0xff]  }
 0x1ca   :  { %5150 = vst [vmem:[#allocation13_spill] sm:$0xff] %v4148_v20  ;;  %v1318_v33 = vpack.c.bf16 %v4148_v20, %v4146_v30  ;;  %v4154_v39 = vmul.f32 %v3515_v31, %v1007_v24  ;;  %3291 = vmatprep.subr.bf16.mxu1 %v3419_v25 }
 0x1cb   :  { %5151 = vst [vmem:[#allocation14_spill] sm:$0xff] %v4152_v37  ;;  %3292 = vmatpush3.bf16.msra.mxu1 %v3419_v25 }
 0x1cc   :  { %5152 = vst [vmem:[#allocation15_spill] sm:$0xff] %v4154_v39  ;;  %v1319_v42 = vpack.c.bf16 %v4154_v39, %v4152_v37  ;;  %3287 = vmatprep.mubr.bf16.mxu1 %v1318_v33  ;;  %v3420_v33 = vld [vmem:[%s5109_s4 + $0x30] sm:$0xff]  }
 0x1cd   :  { %3293 = vmatprep.subr.bf16.mxu1 %v3420_v33 }
 0x1ce   :  { %3288 = vmatmul.mubr.bf16.gmra.mxu1 %v1319_v42 }
 0x1cf   :  { %3294 = vmatpush3.bf16.msra.mxu1 %v3420_v33 }
 0x257   :  { %v3277_v53 = vpop.f32.mrf.mxu1 }
 0x258   :  { %v1483_v56 = vadd.f32 %v3277_v53, %v394_v50  ;;  %v3421_v50 = vld [vmem:[%s5109_s4 + $0x28] sm:$0xff]  }
 0x259   :  { %v1418_v46 = vpop.f32.mrf.mxu1  ;;  %3295 = vmatprep.subr.bf16.mxu1 %v3421_v50 }
 0x25a   :  { %v1499_v60 = vmul.f32 %v1483_v56, %v3793_v27  ;;  %v1481_v8 = vadd.f32 %v1418_v46, %v386_v36  ;;  %v401_v36 = vpop.f32.mrf.mxu0  ;;  %3296 = vmatpush3.bf16.msra.mxu1 %v3421_v50  ;;  %v3422_v56 = vld [vmem:[%s5109_s4 + $0x20] sm:$0xff]   ;;  %v3425_v50 = vld [vmem:[%s5109_s4 + $0x8] sm:$0xff]  }
 0x25b   :  { %v3278_v63 = vpop.f32.mrf.mxu1  ;;  %3297 = vmatprep.subr.bf16.mxu1 %v3422_v56 }
 0x25c   :  { %3516 = vtanh.f32 %v1499_v60  ;;  %v1484_v10 = vadd.f32 %v3278_v63, %v397_v45  ;;  %v1497_v18 = vmul.f32 %v1481_v8, %v3793_v27  ;;  %v3202_v59 = vpop.f32.mrf.mxu0  ;;  %v410_v60 = vadd.f32 %v3201_v48, %v3784_v21  ;;  %v3423_v63 = vld [vmem:[%s5109_s4 + $0x18] sm:$0xff]  }
 0x25d   :  { %v1421_v14 = vpop.f32.mrf.mxu1 }
 0x25e   :  { %v1500_v44 = vmul.f32 %v1484_v10, %v3793_v27  ;;  %v1482_v62 = vadd.f32 %v1421_v14, %v389_v11  ;;  %3298 = vmatpush3.bf16.msra.mxu1 %v3422_v56  ;;  %v404_v11 = vpop.f32.mrf.mxu0  ;;  %v402_v14 = vadd.f32 %v3784_v21, %v401_v36 }
 0x25f   :  { %3299 = vmatprep.subr.bf16.mxu1 %v3423_v63 }
 0x260   :  { %3518 = vtanh.f32 %v1500_v44  ;;  %v1498_v19 = vmul.f32 %v1482_v62, %v3793_v27  ;;  %v3424_v62 = vld [vmem:[%s5109_s4 + $0x10] sm:$0xff]  }
 0x261   :  { %3520 = vtanh.f32 %v1497_v18  ;;  %v3205_v18 = vpop.f32.mrf.mxu0 }
 0x262   :  { %3522 = vtanh.f32 %v1498_v19  ;;  %3300 = vmatpush3.bf16.msra.mxu1 %v3423_v63  ;;  %v3426_v63 = vld [vmem:[%s5109_s4] sm:$0xff]  }
 0x263   :  { %3301 = vmatprep.subr.bf16.mxu1 %v3424_v62  ;;  %v417_v48 = vpop.f32.mrf.mxu0 }
 0x266   :  { %3302 = vmatpush3.bf16.msra.mxu1 %v3424_v62 }
 0x267   :  { %3303 = vmatprep.subr.bf16.mxu1 %v3425_v50 }
 0x269   :  { %v3517_v29 = vpop.eup %3516 }
 0x26a   :  { %v1531_v23 = vmul.f32 %v3517_v29, %v3793_v27  ;;  %v413_v29 = vadd.f32 %v3202_v59, %v3784_v21  ;;  %3304 = vmatpush3.bf16.msra.mxu1 %v3425_v50 }
 0x26b   :  { %3305 = vmatprep.subr.bf16.mxu1 %v3426_v63 }
 0x26c   :  { %v4173_v32 = vadd.f32 %v1531_v23, %v3806_v54 }
 0x26d   :  { %v3519_v31 = vpop.eup %3518 }
 0x26e   :  { %1565 = vrot.lane.b32.xlu0 %v4173_v32, %s3670_s19  ;;  %v1532_v24 = vmul.f32 %v3519_v31, %v3793_v27  ;;  %v3521_v47 = vpop.eup %3520  ;;  %3306 = vmatpush3.bf16.msra.mxu1 %v3426_v63 }
 0x26f   :  { %v1529_v52 = vmul.f32 %v3521_v47, %v3793_v27  ;;  %v3523_v53 = vpop.eup %3522 }
 0x270   :  { %v4182_v42 = vadd.f32 %v1532_v24, %v3806_v54  ;;  %v1530_v46 = vmul.f32 %v3523_v53, %v3793_v27  ;;  %v405_v24 = vadd.f32 %v3784_v21, %v404_v11 }
 0x271   :  { %v4200_v45 = vadd.f32 %v1529_v52, %v3806_v54 }
 0x272   :  { %1597 = vrot.lane.b32.xlu0 %v4173_v32, %s3671_s22  ;;  %1567 = vrot.lane.b32.xlu1 %v4182_v42, %s3670_s19  ;;  %v4212_v8 = vadd.f32 %v1530_v46, %v3806_v54  ;;  %v426_v46 = vadd.f32 %v3205_v18, %v3784_v21 }
 0x276   :  { %1629 = vrot.lane.b32.xlu0 %v4173_v32, %s3672_s25  ;;  %1599 = vrot.lane.b32.xlu1 %v4182_v42, %s3671_s22 }
 0x27a   :  { %1561 = vrot.lane.b32.xlu0 %v4200_v45, %s3670_s19  ;;  %1631 = vrot.lane.b32.xlu1 %v4182_v42, %s3672_s25 }
 0x27e   :  { %1593 = vrot.lane.b32.xlu0 %v4200_v45, %s3671_s22  ;;  %1563 = vrot.lane.b32.xlu1 %v4212_v8, %s3670_s19  ;;  %v3281_v10 = vpop.f32.mrf.mxu1 }
 0x27f   :  { %v1487_v44 = vadd.f32 %v3281_v10, %v410_v60  ;;  %v3206_v60 = vpop.f32.mrf.mxu0  ;;  %v3427_v10 = vld [vmem:[%s5105_s0 + $0x80] sm:$0xff]  }
 0x280   :  { %v1434_v19 = vpop.f32.mrf.mxu1  ;;  %3211 = vmatprep.mubr.msk.bf16.mxu0 %vm214_vm0, %v3427_v10  ;;  %v429_v18 = vadd.f32 %v3206_v60, %v3784_v21 }
 0x281   :  { %v1503_v23 = vmul.f32 %v1487_v44, %v3793_v27  ;;  %v1485_v25 = vadd.f32 %v1434_v19, %v402_v14  ;;  %v3428_v14 = vld [vmem:[%s5105_s0 + $0x88] sm:$0xff]   ;;  %v420_v62 = vpop.f32.mrf.mxu0 }
 0x282   :  { %1625 = vrot.lane.b32.xlu0 %v4200_v45, %s3672_s25  ;;  %1595 = vrot.lane.b32.xlu1 %v4212_v8, %s3671_s22  ;;  %v3282_v31 = vpop.f32.mrf.mxu1 }
 0x283   :  { %3524 = vtanh.f32 %v1503_v23  ;;  %v1501_v33 = vmul.f32 %v1485_v25, %v3793_v27  ;;  %v1488_v47 = vadd.f32 %v3282_v31, %v413_v29  ;;  %3212 = vmatmul.mubr.msk.bf16.gmra.mxu0 %vm214_vm0, %v3428_v14  ;;  %v4253_v29 = vld [vmem:[%s5110_s5] ss:$0 sm:$0xff] }
 0x284   :  { %v1437_v52 = vpop.f32.mrf.mxu1  ;;  %5153 = vst [vmem:[#allocation16_spill] sm:$0xff] %v4253_v29  ;;  %v418_v23 = vadd.f32 %v4253_v29, %v417_v48 }
 0x285   :  { %v1504_v53 = vmul.f32 %v1488_v47, %v3793_v27  ;;  %v1486_v36 = vadd.f32 %v1437_v52, %v405_v24  ;;  %3526 = vtanh.f32 %v1501_v33  ;;  %v3209_v24 = vpop.f32.mrf.mxu0 }
 0x286   :  { %1627 = vrot.lane.b32.xlu1 %v4212_v8, %s3672_s25  ;;  %v3285_v56 = vpop.f32.mrf.mxu1 }
 0x287   :  { %3528 = vtanh.f32 %v1504_v53  ;;  %v1502_v59 = vmul.f32 %v1486_v36, %v3793_v27  ;;  %v1491_v44 = vadd.f32 %v3285_v56, %v426_v46  ;;  %v421_v53 = vadd.f32 %v4253_v29, %v420_v62  ;;  %v433_v56 = vpop.f32.mrf.mxu0 }
 0x288   :  { %v1450_v11 = vpop.f32.mrf.mxu1 }
 0x289   :  { %3530 = vtanh.f32 %v1502_v59  ;;  %v1507_v25 = vmul.f32 %v1491_v44, %v3793_v27  ;;  %v1489_v50 = vadd.f32 %v1450_v11, %v418_v23  ;;  %v442_v11 = vadd.f32 %v4253_v29, %v3209_v24  ;;  %v3210_v14 = vpop.f32.mrf.mxu0 }
 0x28a   :  { %v3286_v19 = vpop.f32.mrf.mxu1  ;;  %v445_v23 = vadd.f32 %v4253_v29, %v3210_v14 }
 0x28b   :  { %v1492_v31 = vadd.f32 %v3286_v19, %v429_v18  ;;  %3532 = vtanh.f32 %v1507_v25  ;;  %v1505_v63 = vmul.f32 %v1489_v50, %v3793_v27 }
 0x28c   :  { %v1453_v47 = vpop.f32.mrf.mxu1 }
 0x28d   :  { %v1508_v36 = vmul.f32 %v1492_v31, %v3793_v27  ;;  %v1490_v10 = vadd.f32 %v1453_v47, %v421_v53 }
 0x28e   :  { %v3289_v59 = vpop.f32.mrf.mxu1 }
 0x28f   :  { %3534 = vtanh.f32 %v1508_v36  ;;  %v1506_v25 = vmul.f32 %v1490_v10, %v3793_v27  ;;  %v1495_v31 = vadd.f32 %v3289_v59, %v442_v11 }
 0x290   :  { %v3525_v33 = vpop.eup %3524  ;;  %v1466_v19 = vpop.f32.mrf.mxu1  ;;  %3536 = vtanh.f32 %v1505_v63 }
 0x291   :  { %v1535_v21 = vmul.f32 %v3525_v33, %v3793_v27  ;;  %3538 = vtanh.f32 %v1506_v25  ;;  %v1511_v50 = vmul.f32 %v1495_v31, %v3793_v27 }
 0x292   :  { %v3527_v52 = vpop.eup %3526  ;;  %v3290_v47 = vpop.f32.mrf.mxu1 }
 0x293   :  { %v4261_v46 = vadd.f32 %v1535_v21, %v3806_v54  ;;  %v1533_v18 = vmul.f32 %v3527_v52, %v3793_v27  ;;  %v434_v21 = vadd.f32 %v4253_v29, %v433_v56  ;;  %v1496_v52 = vadd.f32 %v3290_v47, %v445_v23 }
 0x294   :  { %v3529_v48 = vpop.eup %3528  ;;  %3540 = vtanh.f32 %v1511_v50  ;;  %v1469_v10 = vpop.f32.mrf.mxu1 }
 0x295   :  { %1573 = vrot.lane.b32.xlu0 %v4261_v46, %s3670_s19  ;;  %v1536_v60 = vmul.f32 %v3529_v48, %v3793_v27  ;;  %v4279_v24 = vadd.f32 %v1533_v18, %v3806_v54  ;;  %v436_v48 = vpop.f32.mrf.mxu0  ;;  %v1493_v59 = vadd.f32 %v1466_v19, %v434_v21  ;;  %v1512_v56 = vmul.f32 %v1496_v52, %v3793_v27 }
 0x296   :  { %v3531_v62 = vpop.eup %3530 }
 0x297   :  { %v4269_v44 = vadd.f32 %v1536_v60, %v3806_v54  ;;  %v1534_v33 = vmul.f32 %v3531_v62, %v3793_v27  ;;  %v437_v60 = vadd.f32 %v4253_v29, %v436_v48  ;;  %v1509_v14 = vmul.f32 %v1493_v59, %v3793_v27  ;;  %v622_v29 = vld [vmem:[%s5107_s2 + $0x38] sm:$0xff] }
 0x298   :  { %v3533_v36 = vpop.eup %3532  ;;  %3542 = vtanh.f32 %v1512_v56  ;;  %vm1143_vm2 = vcmp.eq.s32.totalorder %v622_v29, 1 }
 0x299   :  { %1605 = vrot.lane.b32.xlu0 %v4261_v46, %s3671_s22  ;;  %1575 = vrot.lane.b32.xlu1 %v4269_v44, %s3670_s19  ;;  %v4289_v53 = vadd.f32 %v1534_v33, %v3806_v54  ;;  %v1539_v63 = vmul.f32 %v3533_v36, %v3793_v27  ;;  %v1494_v62 = vadd.f32 %v1469_v10, %v437_v60  ;;  %3544 = vtanh.f32 %v1509_v14 }
 0x29b   :  { %v4304_v19 = vadd.f32 %v1539_v63, %v3806_v54  ;;  %v1510_v25 = vmul.f32 %v1494_v62, %v3793_v27 }
 0x29c   :  { %v3535_v11 = vpop.eup %3534 }
 0x29d   :  { %1569 = vrot.lane.b32.xlu0 %v4279_v24, %s3670_s19  ;;  %1607 = vrot.lane.b32.xlu1 %v4269_v44, %s3671_s22  ;;  %v3537_v18 = vpop.eup %3536  ;;  %v1540_v23 = vmul.f32 %v3535_v11, %v3793_v27  ;;  %3546 = vtanh.f32 %v1510_v25  ;;  %v3429_v11 = vld [vmem:[%s5105_s0 + $0x90] sm:$0xff]  }
 0x29e   :  { %v1537_v33 = vmul.f32 %v3537_v18, %v3793_v27  ;;  %v3539_v47 = vpop.eup %3538  ;;  %v3430_v18 = vld [vmem:[%s5105_s0 + $0x98] sm:$0xff]   ;;  %3215 = vmatprep.mubr.msk.bf16.mxu0 %vm214_vm0, %v3429_v11 }
 0x29f   :  { %v4313_v31 = vadd.f32 %v1540_v23, %v3806_v54  ;;  %v1538_v50 = vmul.f32 %v3539_v47, %v3793_v27  ;;  %3216 = vmatmul.mubr.msk.bf16.gmra.mxu0 %vm214_vm0, %v3430_v18  ;;  %v3431_v47 = vld [vmem:[%s5105_s0 + $0xa0] sm:$0xff]  }
 0x2a0   :  { %v4321_v21 = vadd.f32 %v1537_v33, %v3806_v54  ;;  %3219 = vmatprep.mubr.msk.bf16.mxu0 %vm214_vm0, %v3431_v47 }
 0x2a1   :  { %1601 = vrot.lane.b32.xlu0 %v4279_v24, %s3671_s22  ;;  %1571 = vrot.lane.b32.xlu1 %v4289_v53, %s3670_s19  ;;  %v3541_v52 = vpop.eup %3540  ;;  %v4329_v36 = vadd.f32 %v1538_v50, %v3806_v54  ;;  %v3432_v50 = vld [vmem:[%s5105_s0 + $0xa8] sm:$0xff]  }
 0x2a2   :  { %v1543_v48 = vmul.f32 %v3541_v52, %v3793_v27  ;;  %v3433_v52 = vld [vmem:[%s5105_s0 + $0xb0] sm:$0xff]  }
 0x2a4   :  { %v4337_v60 = vadd.f32 %v1543_v48, %v3806_v54  ;;  %v3434_v48 = vld [vmem:[%s5105_s0 + $0xb8] sm:$0xff]  }
 0x2a5   :  { %1633 = vrot.lane.b32.xlu0 %v4279_v24, %s3672_s25  ;;  %1603 = vrot.lane.b32.xlu1 %v4289_v53, %s3671_s22  ;;  %v3543_v59 = vpop.eup %3542 }
 0x2a6   :  { %v1544_v56 = vmul.f32 %v3543_v59, %v3793_v27  ;;  %v3545_v63 = vpop.eup %3544  ;;  %v615_v59 = vld [vmem:[%s5107_s2] sm:$0xff] }
 0x2a7   :  { %v1541_v14 = vmul.f32 %v3545_v63, %v3793_v27  ;;  %3220 = vmatmul.mubr.msk.bf16.gmra.mxu0 %vm214_vm0, %v3432_v50  ;;  %vm1136_vm4 = vcmp.eq.s32.totalorder %v615_v59, 1  ;;  %v616_v63 = vld [vmem:[%s5107_s2 + $0x8] sm:$0xff]  ;;  %vm1785_vm10 = vcmp.eq.s32.totalorder %v615_v59, 2  ;;  %vm2434_vm14 = vcmp.eq.s32.totalorder %v615_v59, 3 }
 0x2a8   :  { %v4348_v10 = vadd.f32 %v1544_v56, %v3806_v54  ;;  %3223 = vmatprep.mubr.msk.bf16.mxu0 %vm214_vm0, %v3433_v52  ;;  %v618_v56 = vld [vmem:[%s5107_s2 + $0x18] sm:$0xff]  ;;  %v1168_v11 = vsel %vm1136_vm4, 1, %v5137_v61  ;;  %vm1137_vm6 = vcmp.eq.s32.totalorder %v616_v63, 1  ;;  %vm1786_vm7 = vcmp.eq.s32.totalorder %v616_v63, 2 }
 0x2a9   :  { %1635 = vrot.lane.b32.xlu1 %v4289_v53, %s3672_s25  ;;  %1581 = vrot.lane.b32.xlu0 %v4304_v19, %s3670_s19  ;;  %v4361_v23 = vadd.f32 %v1541_v14, %v3806_v54  ;;  %vm1139_vm5 = vcmp.eq.s32.totalorder %v618_v56, 1  ;;  %v617_v14 = vld [vmem:[%s5107_s2 + $0x10] sm:$0xff]  ;;  %v1818_v47 = vsel %vm1786_vm7, 1, %v5137_v61  ;;  %vm1788_vm9 = vcmp.eq.s32.totalorder %v618_v56, 2 }
 0x2aa   :  { %v3547_v62 = vpop.eup %3546  ;;  %v1171_v18 = vsel %vm1139_vm5, 1, %v5137_v61  ;;  %vm1138_vm8 = vcmp.eq.s32.totalorder %v617_v14, 1  ;;  %v1817_v37 = vsel %vm1785_vm10, 1, %v5137_v61  ;;  %vm2435_vm11 = vcmp.eq.s32.totalorder %v616_v63, 3 }
 0x2ab   :  { %v1542_v25 = vmul.f32 %v3547_v62, %v3793_v27  ;;  %v1169_v62 = vsel %vm1137_vm6, 1, %v5137_v61  ;;  %v1170_v50 = vsel %vm1138_vm8, 1, %v5137_v61  ;;  %vm1787_vm12 = vcmp.eq.s32.totalorder %v617_v14, 2 }
 0x2ac   :  { %vm2437_vm13 = vcmp.eq.s32.totalorder %v618_v56, 3  ;;  %vm2436_vm1 = vcmp.eq.s32.totalorder %v617_v14, 3  ;;  %vm1792_vm6 = vcmp.eq.s32.totalorder %v622_v29, 2  ;;  %vm2441_vm10 = vcmp.eq.s32.totalorder %v622_v29, 3 }
 0x2ad   :  { %1613 = vrot.lane.b32.xlu0 %v4304_v19, %s3671_s22  ;;  %1583 = vrot.lane.b32.xlu1 %v4313_v31, %s3670_s19  ;;  %v4369_v33 = vadd.f32 %v1542_v25, %v3806_v54 }
 0x2af   :  { %3224 = vmatmul.mubr.msk.bf16.gmra.mxu0 %vm214_vm0, %v3434_v48 }
 0x2b1   :  { %1577 = vrot.lane.b32.xlu0 %v4321_v21, %s3670_s19  ;;  %1615 = vrot.lane.b32.xlu1 %v4313_v31, %s3671_s22 }
 0x2b5   :  { %1609 = vrot.lane.b32.xlu0 %v4321_v21, %s3671_s22  ;;  %1579 = vrot.lane.b32.xlu1 %v4329_v36, %s3670_s19 }
 0x2b9   :  { %1611 = vrot.lane.b32.xlu1 %v4329_v36, %s3671_s22  ;;  %1589 = vrot.lane.b32.xlu0 %v4337_v60, %s3670_s19 }
 0x2bd   :  { %1621 = vrot.lane.b32.xlu0 %v4337_v60, %s3671_s22  ;;  %1591 = vrot.lane.b32.xlu1 %v4348_v10, %s3670_s19 }
 0x2c1   :  { %1585 = vrot.lane.b32.xlu0 %v4361_v23, %s3670_s19  ;;  %1623 = vrot.lane.b32.xlu1 %v4348_v10, %s3671_s22 }
 0x2c5   :  { %1617 = vrot.lane.b32.xlu0 %v4361_v23, %s3671_s22  ;;  %1587 = vrot.lane.b32.xlu1 %v4369_v33, %s3670_s19 }
 0x2c9   :  { %1637 = vrot.lane.b32.xlu0 %v4261_v46, %s3672_s25  ;;  %1619 = vrot.lane.b32.xlu1 %v4369_v33, %s3671_s22 }
 0x2cd   :  { %1641 = vrot.lane.b32.xlu0 %v4321_v21, %s3672_s25  ;;  %1639 = vrot.lane.b32.xlu1 %v4269_v44, %s3672_s25 }
 0x2d1   :  { %1645 = vrot.lane.b32.xlu0 %v4304_v19, %s3672_s25  ;;  %1643 = vrot.lane.b32.xlu1 %v4329_v36, %s3672_s25 }
 0x2d5   :  { %1649 = vrot.lane.b32.xlu0 %v4361_v23, %s3672_s25  ;;  %1647 = vrot.lane.b32.xlu1 %v4313_v31, %s3672_s25 }
 0x2d9   :  { %1653 = vrot.lane.b32.xlu0 %v4337_v60, %s3672_s25  ;;  %1651 = vrot.lane.b32.xlu1 %v4369_v33, %s3672_s25 }
 0x2dd   :  { %1185 = vperm.xlu0 %3384, %v1168_v11   ;;  %1655 = vrot.lane.b32.xlu1 %v4348_v10, %s3672_s25  ;;  %v1820_v11 = vsel %vm1788_vm9, 1, %v5137_v61 }
 0x2e0   :  { %v1566_v25 = vpop.permute.xlu0 %1565 }
 0x2e1   :  { %1194 = vperm.xlu0 %3384, %v1171_v18   ;;  %1188 = vperm.xlu1 %3385, %v1169_v62   ;;  %v2467_v18 = vsel %vm2435_vm11, 1, %v5137_v61  ;;  %v1819_v62 = vsel %vm1787_vm12, 1, %v5137_v61 }
 0x2e4   :  { %v1568_v52 = vpop.permute.xlu1 %1567  ;;  %v1598_v48 = vpop.permute.xlu0 %1597 }
 0x2e5   :  { %1837 = vperm.xlu0 %3384, %v1818_v47   ;;  %1191 = vperm.xlu1 %3385, %v1170_v50   ;;  %v620_v50 = vld [vmem:[%s5107_s2 + $0x28] sm:$0xff]  ;;  %v1676_v56 = vmul.f32 %v1568_v52, %v4049_v7  ;;  %v1691_v59 = vmul.f32 %v1598_v48, %v4173_v32  ;;  %v1675_v7 = vmul.f32 %v1566_v25, %v4053_v12  ;;  %v2468_v52 = vsel %vm2436_vm1, 1, %v5137_v61 }
 0x2e6   :  { %vm1141_vm15 = vcmp.eq.s32.totalorder %v620_v50, 1  ;;  %vm1790_vm4 = vcmp.eq.s32.totalorder %v620_v50, 2  ;;  %vm2439_vm8 = vcmp.eq.s32.totalorder %v620_v50, 3 }
 0x2e7   :  { %v1173_v32 = vsel %vm1141_vm15, 1, %v5137_v61 }
 0x2e8   :  { %v1600_v39 = vpop.permute.xlu1 %1599  ;;  %v4432_v30 = vpop.permute.xlu0 %1629 }
 0x2e9   :  { %1843 = vperm.xlu0 %3384, %v1820_v11   ;;  %1834 = vperm.xlu1 %3385, %v1817_v37   ;;  %v1692_v63 = vmul.f32 %v1600_v39, %v4182_v42  ;;  %v2469_v11 = vsel %vm2437_vm13, 1, %v5137_v61  ;;  %v2466_v37 = vsel %vm2434_vm14, 1, %v5137_v61  ;;  %v619_v39 = vld [vmem:[%s5107_s2 + $0x20] sm:$0xff] }
 0x2ea   :  { %vm1140_vm3 = vcmp.eq.s32.totalorder %v619_v39, 1  ;;  %vm1789_vm7 = vcmp.eq.s32.totalorder %v619_v39, 2  ;;  %vm2438_vm11 = vcmp.eq.s32.totalorder %v619_v39, 3 }
 0x2eb   :  { %v4455_v14 = vadd.f32 %v1692_v63, %v1676_v56  ;;  %v1172_v25 = vsel %vm1140_vm3, 1, %v5137_v61  ;;  %v2471_v63 = vsel %vm2439_vm8, 1, %v5137_v61 }
 0x2ec   :  { %v4436_v20 = vpop.permute.xlu1 %1631  ;;  %v1562_v47 = vpop.permute.xlu0 %1561 }
 0x2ed   :  { %2486 = vperm.xlu0 %3384, %v2467_v18   ;;  %1840 = vperm.xlu1 %3385, %v1819_v62   ;;  %v1673_v42 = vmul.f32 %v1562_v47, %v4051_v9  ;;  %5154 = vst [vmem:[#allocation17_spill] sm:$0xff] %v4455_v14  ;;  %v4461_v62 = vadd.f32 %v1691_v59, %v1675_v7  ;;  %3548 = vtanh.f32 %v4455_v14 }
 0x2ef   :  { %5156 = vst [vmem:[#allocation19_spill] sm:$0xff] %v4461_v62 }
 0x2f0   :  { %v1564_v54 = vpop.permute.xlu1 %1563  ;;  %v1594_v27 = vpop.permute.xlu0 %1593 }
 0x2f1   :  { %v1689_v18 = vmul.f32 %v1594_v27, %v4200_v45  ;;  %2492 = vperm.xlu0 %3384, %v2469_v11   ;;  %2483 = vperm.xlu1 %3385, %v2466_v37   ;;  %v621_v27 = vld [vmem:[%s5107_s2 + $0x30] sm:$0xff]  ;;  %v1674_v9 = vmul.f32 %v1564_v54, %v4058_v15  ;;  %v1175_v45 = vsel %vm1143_vm2, 1, %v5137_v61  ;;  %v1822_v54 = vsel %vm1790_vm4, 1, %v5137_v61 }
 0x2f2   :  { %vm1142_vm5 = vcmp.eq.s32.totalorder %v621_v27, 1  ;;  %vm1791_vm9 = vcmp.eq.s32.totalorder %v621_v27, 2  ;;  %vm2440_vm13 = vcmp.eq.s32.totalorder %v621_v27, 3 }
 0x2f3   :  { %v4459_v48 = vadd.f32 %v1689_v18, %v1673_v42  ;;  %v1174_v15 = vsel %vm1142_vm5, 1, %v5137_v61  ;;  %v1823_v11 = vsel %vm1791_vm9, 1, %v5137_v61  ;;  %v4485_v42 = vld [vmem:[%s5107_s2 + $0x48] sm:$0xff] }
 0x2f4   :  { %v1596_v49 = vpop.permute.xlu1 %1595  ;;  %v1626_v56 = vpop.permute.xlu0 %1625  ;;  %vm1145_vm12 = vcmp.eq.s32.totalorder %v4485_v42, 1  ;;  %vm1794_vm1 = vcmp.eq.s32.totalorder %v4485_v42, 2  ;;  %vm2443_vm5 = vcmp.eq.s32.totalorder %v4485_v42, 3 }
 0x2f5   :  { %5155 = vst [vmem:[#allocation18_spill] sm:$0xff] %v4459_v48  ;;  %v1690_v12 = vmul.f32 %v1596_v49, %v4212_v8  ;;  %1200 = vperm.xlu0 %3384, %v1173_v32   ;;  %2489 = vperm.xlu1 %3385, %v2468_v52   ;;  %3550 = vtanh.f32 %v4459_v48  ;;  %v1824_v49 = vsel %vm1792_vm6, 1, %v5137_v61  ;;  %v1821_v8 = vsel %vm1789_vm7, 1, %v5137_v61 }
 0x2f6   :  { %3552 = vtanh.f32 %v4461_v62  ;;  %v2473_v52 = vsel %vm2441_vm10, 1, %v5137_v61  ;;  %v1177_v27 = vsel %vm1145_vm12, 1, %v5137_v61 }
 0x2f7   :  { %v4472_v47 = vadd.f32 %v1690_v12, %v1674_v9  ;;  %v2470_v9 = vsel %vm2438_vm11, 1, %v5137_v61 }
 0x2f8   :  { %v1628_v32 = vpop.permute.xlu1 %1627 }
 0x2f9   :  { %5157 = vst [vmem:[#allocation20_spill] sm:$0xff] %v4472_v47  ;;  %3554 = vtanh.f32 %v4472_v47  ;;  %1206 = vperm.xlu0 %3384, %v1175_v45   ;;  %1197 = vperm.xlu1 %3385, %v1172_v25   ;;  %v623_v25 = vld [vmem:[%s5107_s2 + $0x40] sm:$0xff] }
 0x2fa   :  { %v3549_v37 = vpop.eup %3548  ;;  %vm1144_vm15 = vcmp.eq.s32.totalorder %v623_v25, 1  ;;  %vm1793_vm4 = vcmp.eq.s32.totalorder %v623_v25, 2  ;;  %vm2442_vm8 = vcmp.eq.s32.totalorder %v623_v25, 3  ;;  %v4561_v25 = vld [vmem:[%s5107_s2 + $0x60] sm:$0xff] }
 0x2fb   :  { %v4488_v7 = vmul.f32 %v3549_v37, %v4436_v20  ;;  %v626_v20 = vld [vmem:[%s5107_s2 + $0x58] sm:$0xff]  ;;  %v1176_v37 = vsel %vm1144_vm15, 1, %v5137_v61  ;;  %vm1148_vm12 = vcmp.eq.s32.totalorder %v4561_v25, 1  ;;  %vm1797_vm15 = vcmp.eq.s32.totalorder %v4561_v25, 2 }
 0x2fc   :  { %vm1147_vm14 = vcmp.eq.s32.totalorder %v626_v20, 1  ;;  %vm1796_vm3 = vcmp.eq.s32.totalorder %v626_v20, 2  ;;  %vm2445_vm7 = vcmp.eq.s32.totalorder %v626_v20, 3  ;;  %v4556_v20 = vld [vmem:[%s5107_s2 + $0x78] sm:$0xff] }
 0x2fd   :  { %1849 = vperm.xlu0 %3384, %v1822_v54   ;;  %1203 = vperm.xlu1 %3385, %v1174_v15   ;;  %vm1151_vm11 = vcmp.eq.s32.totalorder %v4556_v20, 1 }
 0x301   :  { %1855 = vperm.xlu0 %3384, %v1824_v49   ;;  %1846 = vperm.xlu1 %3385, %v1821_v8  }
 0x302   :  { %v3551_v59 = vpop.eup %3550 }
 0x303   :  { %v3553_v18 = vpop.eup %3552  ;;  %v4492_v29 = vmul.f32 %v3551_v59, %v1626_v56 }
 0x304   :  { %v4500_v45 = vmul.f32 %v3553_v18, %v4432_v30  ;;  %v2472_v30 = vsel %vm2440_vm13, 1, %v5137_v61  ;;  %v1826_v18 = vsel %vm1794_vm1, 1, %v5137_v61 }
 0x305   :  { %2498 = vperm.xlu0 %3384, %v2471_v63   ;;  %1852 = vperm.xlu1 %3385, %v1823_v11   ;;  %v625_v63 = vld [vmem:[%s5107_s2 + $0x50] sm:$0xff]  ;;  %v1179_v11 = vsel %vm1147_vm14, 1, %v5137_v61 }
 0x306   :  { %v3555_v50 = vpop.eup %3554  ;;  %v1962_v15 = vpack.c.bf16 %v4488_v7, %v4500_v45  ;;  %vm1146_vm2 = vcmp.eq.s32.totalorder %v625_v63, 1  ;;  %vm1795_vm6 = vcmp.eq.s32.totalorder %v625_v63, 2  ;;  %vm2444_vm10 = vcmp.eq.s32.totalorder %v625_v63, 3  ;;  %v4570_v63 = vld [vmem:[%s5107_s2 + $0x70] sm:$0xff] }
 0x307   :  { %v4494_v39 = vmul.f32 %v3555_v50, %v1628_v32  ;;  %v4496_v12 = vpop.permute.xlu0 %1573  ;;  %v1178_v50 = vsel %vm1146_vm2, 1, %v5137_v61  ;;  %5161 = vst [vmem:[#allocation24_spill] sm:$0xff] %v4570_v63  ;;  %vm1150_vm14 = vcmp.eq.s32.totalorder %v4570_v63, 1 }
 0x308   :  { %v1182_v14 = vsel %vm1150_vm14, 1, %v5137_v61  ;;  %v1679_v62 = vmul.f32 %v4496_v12, %v4090_v13  ;;  %v1829_v12 = vsel %vm1797_vm15, 1, %v5137_v61 }
 0x309   :  { %v1961_v54 = vpack.c.bf16 %v4494_v39, %v4492_v29  ;;  %2504 = vperm.xlu0 %3384, %v2473_v52   ;;  %2495 = vperm.xlu1 %3385, %v2470_v9  }
 0x30b   :  { %v4514_v49 = vpop.permute.xlu1 %1575  ;;  %3307 = vmatprep.mubr.bf16.mxu1 %v1961_v54  ;;  %v4516_v8 = vpop.permute.xlu0 %1605 }
 0x30c   :  { %3308 = vmatmul.mubr.bf16.vlgmr.msra.gmra.mxu1 %v1962_v15 }
 0x30d   :  { %1212 = vperm.xlu0 %3384, %v1177_v27   ;;  %2501 = vperm.xlu1 %3385, %v2472_v30   ;;  %v1828_v27 = vsel %vm1796_vm3, 1, %v5137_v61  ;;  %v1825_v30 = vsel %vm1793_vm4, 1, %v5137_v61 }
 0x30f   :  { %v4523_v56 = vpop.permute.xlu1 %1607  ;;  %v1570_v59 = vpop.permute.xlu0 %1569 }
 0x310   :  { %v1677_v9 = vmul.f32 %v1570_v59, %v4069_v41  ;;  %v1827_v59 = vsel %vm1795_vm6, 1, %v5137_v61 }
 0x311   :  { %1218 = vperm.xlu0 %3384, %v1179_v11   ;;  %1209 = vperm.xlu1 %3385, %v1176_v37  }
 0x313   :  { %v1572_v32 = vpop.permute.xlu1 %1571  ;;  %v1602_v52 = vpop.permute.xlu0 %1601 }
 0x314   :  { %v1693_v54 = vmul.f32 %v1602_v52, %v4279_v24  ;;  %v1678_v47 = vmul.f32 %v1572_v32, %v4077_v1  ;;  %v2475_v24 = vsel %vm2443_vm5, 1, %v5137_v61  ;;  %v4548_v1 = vld [vmem:[%s5107_s2 + $0x68] sm:$0xff]  ;;  %v2476_v52 = vsel %vm2444_vm10, 1, %v5137_v61 }
 0x315   :  { %1861 = vperm.xlu0 %3384, %v1826_v18   ;;  %1215 = vperm.xlu1 %3385, %v1178_v50   ;;  %5160 = vst [vmem:[#allocation23_spill] sm:$0xff] %v4548_v1  ;;  %vm1149_vm9 = vcmp.eq.s32.totalorder %v4548_v1, 1  ;;  %vm1798_vm13 = vcmp.eq.s32.totalorder %v4548_v1, 2 }
 0x316   :  { %v4530_v15 = vadd.f32 %v1693_v54, %v1677_v9  ;;  %v1181_v32 = vsel %vm1149_vm9, 1, %v5137_v61 }
 0x317   :  { %v1604_v11 = vpop.permute.xlu1 %1603  ;;  %v1634_v37 = vpop.permute.xlu0 %1633 }
 0x318   :  { %5158 = vst [vmem:[#allocation21_spill] sm:$0xff] %v4530_v15  ;;  %v1694_v48 = vmul.f32 %v1604_v11, %v4289_v53  ;;  %3556 = vtanh.f32 %v4530_v15  ;;  %v2477_v53 = vsel %vm2445_vm7, 1, %v5137_v61 }
 0x319   :  { %1867 = vperm.xlu0 %3384, %v1828_v27   ;;  %1858 = vperm.xlu1 %3385, %v1825_v30   ;;  %v1183_v27 = vsel %vm1151_vm11, 1, %v5137_v61  ;;  %v1180_v30 = vsel %vm1148_vm12, 1, %v5137_v61 }
 0x31a   :  { %v4538_v41 = vadd.f32 %v1694_v48, %v1678_v47  ;;  %v2474_v48 = vsel %vm2442_vm8, 1, %v5137_v61 }
 0x31b   :  { %v1636_v18 = vpop.permute.xlu1 %1635  ;;  %v4542_v50 = vpop.permute.xlu0 %1581 }
 0x31c   :  { %5159 = vst [vmem:[#allocation22_spill] sm:$0xff] %v4538_v41  ;;  %3558 = vtanh.f32 %v4538_v41 }
 0x31d   :  { %2510 = vperm.xlu0 %3384, %v2475_v24   ;;  %1864 = vperm.xlu1 %3385, %v1827_v59  }
 0x31f   :  { %v1584_v47 = vpop.permute.xlu1 %1583  ;;  %v1614_v42 = vpop.permute.xlu0 %1613 }
 0x321   :  { %2516 = vperm.xlu0 %3384, %v2477_v53   ;;  %2507 = vperm.xlu1 %3385, %v2474_v48   ;;  %v1695_v48 = vmul.f32 %v4516_v8, %v4261_v46  ;;  %v1680_v46 = vmul.f32 %v4514_v49, %v4093_v3 }
 0x323   :  { %v1616_v9 = vpop.permute.xlu1 %1615  ;;  %v1578_v54 = vpop.permute.xlu0 %1577 }
 0x325   :  { %1224 = vperm.xlu0 %3384, %v1181_v32   ;;  %2513 = vperm.xlu1 %3385, %v2476_v52   ;;  %v3557_v11 = vpop.eup %3556  ;;  %v1830_v32 = vsel %vm1798_vm13, 1, %v5137_v61  ;;  %v1696_v52 = vmul.f32 %v4523_v56, %v4269_v44  ;;  %v4593_v44 = vadd.f32 %v1695_v48, %v1679_v62  ;;  %v1699_v62 = vmul.f32 %v1614_v42, %v4304_v19 }
 0x326   :  { %v4581_v41 = vmul.f32 %v3557_v11, %v1634_v37 }
 0x327   :  { %v1580_v24 = vpop.permute.xlu1 %1579  ;;  %v1610_v59 = vpop.permute.xlu0 %1609  ;;  %v4596_v37 = vadd.f32 %v1696_v52, %v1680_v46  ;;  %3560 = vtanh.f32 %v4593_v44 }
 0x328   :  { %v1697_v56 = vmul.f32 %v1610_v59, %v4321_v21  ;;  %v1682_v49 = vmul.f32 %v1580_v24, %v4102_v22  ;;  %v1684_v22 = vmul.f32 %v1584_v47, %v4107_v28 }
 0x329   :  { %v3559_v53 = vpop.eup %3558  ;;  %1230 = vperm.xlu0 %3384, %v1183_v27   ;;  %1221 = vperm.xlu1 %3385, %v1180_v30   ;;  %3562 = vtanh.f32 %v4596_v37 }
 0x32a   :  { %v4583_v15 = vmul.f32 %v3559_v53, %v1636_v18  ;;  %v1681_v18 = vmul.f32 %v1578_v54, %v4098_v16  ;;  %v1683_v16 = vmul.f32 %v4542_v50, %v4104_v26 }
 0x32b   :  { %v1612_v1 = vpop.permute.xlu1 %1611  ;;  %v1590_v63 = vpop.permute.xlu0 %1589 }
 0x32c   :  { %v1963_v8 = vpack.c.bf16 %v4583_v15, %v4581_v41  ;;  %v1698_v13 = vmul.f32 %v1612_v1, %v4329_v36  ;;  %v4604_v21 = vadd.f32 %v1697_v56, %v1681_v18  ;;  %v1700_v36 = vmul.f32 %v1616_v9, %v4313_v31 }
 0x32d   :  { %1873 = vperm.xlu0 %3384, %v1830_v32   ;;  %1227 = vperm.xlu1 %3385, %v1182_v14   ;;  %v4613_v30 = vadd.f32 %v1699_v62, %v1683_v16  ;;  %v1687_v47 = vmul.f32 %v1590_v63, %v4118_v5 }
 0x32e   :  { %3311 = vmatprep.mubr.bf16.mxu1 %v1963_v8  ;;  %v4608_v14 = vadd.f32 %v1698_v13, %v1682_v49  ;;  %3564 = vtanh.f32 %v4604_v21  ;;  %v4616_v19 = vadd.f32 %v1700_v36, %v1684_v22 }
 0x32f   :  { %v1592_v27 = vpop.permute.xlu1 %1591  ;;  %v1622_v3 = vpop.permute.xlu0 %1621 }
 0x330   :  { %3566 = vtanh.f32 %v4608_v14  ;;  %v1703_v26 = vmul.f32 %v1622_v3, %v4337_v60  ;;  %v1688_v53 = vmul.f32 %v1592_v27, %v4120_v55 }
 0x331   :  { %1870 = vperm.xlu1 %3385, %v1829_v12   ;;  %3568 = vtanh.f32 %v4613_v30 }
 0x332   :  { %3570 = vtanh.f32 %v4616_v19  ;;  %v4631_v48 = vadd.f32 %v1703_v26, %v1687_v47 }
 0x333   :  { %v1624_v1 = vpop.permute.xlu1 %1623  ;;  %v1586_v54 = vpop.permute.xlu0 %1585 }
 0x334   :  { %v1685_v31 = vmul.f32 %v1586_v54, %v4115_v51  ;;  %v1704_v28 = vmul.f32 %v1624_v1, %v4348_v10  ;;  %5163 = vst [vmem:[#allocation26_spill] sm:$0xff] %v4631_v48  ;;  %v3561_v32 = vpop.eup %3560 }
 0x336   :  { %v4633_v60 = vadd.f32 %v1704_v28, %v1688_v53  ;;  %v3563_v52 = vpop.eup %3562 }
 0x337   :  { %v1588_v42 = vpop.permute.xlu1 %1587  ;;  %v1618_v11 = vpop.permute.xlu0 %1617 }
 0x338   :  { %v1701_v9 = vmul.f32 %v1618_v11, %v4361_v23  ;;  %v1686_v51 = vmul.f32 %v1588_v42, %v4123_v40  ;;  %5164 = vst [vmem:[#allocation27_spill] sm:$0xff] %v4633_v60 }
 0x33a   :  { %v4625_v50 = vadd.f32 %v1701_v9, %v1685_v31 }
 0x33b   :  { %v1620_v24 = vpop.permute.xlu1 %1619  ;;  %v1638_v59 = vpop.permute.xlu0 %1637 }
 0x33c   :  { %5162 = vst [vmem:[#allocation25_spill] sm:$0xff] %v4625_v50  ;;  %v1702_v23 = vmul.f32 %v1620_v24, %v4369_v33  ;;  %3572 = vtanh.f32 %v4625_v50  ;;  %v4639_v63 = vmul.f32 %v3561_v32, %v1638_v59  ;;  %v3565_v40 = vpop.eup %3564 }
 0x33d   :  { %v3567_v8 = vpop.eup %3566 }
 0x33e   :  { %v4636_v10 = vadd.f32 %v1702_v23, %v1686_v51  ;;  %v3569_v27 = vpop.eup %3568 }
 0x33f   :  { %v1640_v46 = vpop.permute.xlu1 %1639  ;;  %v1642_v5 = vpop.permute.xlu0 %1641 }
 0x340   :  { %5165 = vst [vmem:[#allocation28_spill] sm:$0xff] %v4636_v10  ;;  %3574 = vtanh.f32 %v4636_v10  ;;  %v4641_v55 = vmul.f32 %v3563_v52, %v1640_v46  ;;  %v4647_v12 = vmul.f32 %v3565_v40, %v1642_v5  ;;  %v3571_v49 = vpop.eup %3570 }
 0x341   :  { %3576 = vtanh.f32 %v4631_v48 }
 0x342   :  { %3578 = vtanh.f32 %v4633_v60  ;;  %v1964_v33 = vpack.c.bf16 %v4641_v55, %v4639_v63 }
 0x343   :  { %v1644_v56 = vpop.permute.xlu1 %1643  ;;  %v1646_v13 = vpop.permute.xlu0 %1645 }
 0x344   :  { %v4649_v18 = vmul.f32 %v3567_v8, %v1644_v56  ;;  %3312 = vmatmul.mubr.bf16.gmra.mxu1 %v1964_v33  ;;  %v4653_v16 = vmul.f32 %v3569_v27, %v1646_v13 }
 0x346   :  { %v1965_v3 = vpack.c.bf16 %v4649_v18, %v4647_v12 }
 0x347   :  { %v1648_v62 = vpop.permute.xlu1 %1647  ;;  %v1650_v36 = vpop.permute.xlu0 %1649 }
 0x348   :  { %v4655_v1 = vmul.f32 %v3571_v49, %v1648_v62  ;;  %3315 = vmatprep.mubr.bf16.mxu1 %v1965_v3 }
 0x349   :  { %v3573_v22 = vpop.eup %3572 }
 0x34a   :  { %v1966_v54 = vpack.c.bf16 %v4655_v1, %v4653_v16  ;;  %v4659_v26 = vmul.f32 %v3573_v22, %v1650_v36 }
 0x34b   :  { %v1652_v42 = vpop.permute.xlu1 %1651  ;;  %v1654_v31 = vpop.permute.xlu0 %1653 }
 0x34c   :  { %3316 = vmatmul.mubr.bf16.gmra.mxu1 %v1966_v54  ;;  %5166 = vst [vmem:[#allocation29_spill] sm:$0xff] %v4659_v26 }
 0x34d   :  { %v3575_v11 = vpop.eup %3574 }
 0x34e   :  { %v3577_v9 = vpop.eup %3576  ;;  %v4661_v28 = vmul.f32 %v3575_v11, %v1652_v42 }
 0x34f   :  { %v3579_v47 = vpop.eup %3578  ;;  %v1656_v24 = vpop.permute.xlu1 %1655  ;;  %v4665_v53 = vmul.f32 %v3577_v9, %v1654_v31 }
 0x350   :  { %5167 = vst [vmem:[#allocation30_spill] sm:$0xff] %v4661_v28  ;;  %v1967_v59 = vpack.c.bf16 %v4661_v28, %v4659_v26  ;;  %v4667_v51 = vmul.f32 %v3579_v47, %v1656_v24 }
 0x351   :  { %5168 = vst [vmem:[#allocation31_spill] sm:$0xff] %v4665_v53 }
 0x352   :  { %5169 = vst [vmem:[#allocation32_spill] sm:$0xff] %v4667_v51  ;;  %v1968_v23 = vpack.c.bf16 %v4667_v51, %v4665_v53  ;;  %3319 = vmatprep.mubr.bf16.mxu1 %v1967_v59 }
 0x354   :  { %3320 = vmatmul.mubr.bf16.gmra.mxu1 %v1968_v23 }
 0x358   :  { %v1186_v32 = vpop.permute.xlu0 %1185 }
 0x359   :  { %vm1232_vm3 = vcmp.eq.s32.totalorder %v1186_v32, 1 }
 0x35a   :  { %v1248_v27 = vsel %vm1232_vm3, %v4065_v35, 0.0 }
 0x35c   :  { %v1189_v52 = vpop.permute.xlu1 %1188  ;;  %v1195_v46 = vpop.permute.xlu0 %1194 }
 0x35d   :  { %vm1233_vm1 = vcmp.eq.s32.totalorder %v1189_v52, 1  ;;  %vm1235_vm4 = vcmp.eq.s32.totalorder %v1195_v46, 1 }
 0x35e   :  { %v1249_v33 = vsel %vm1233_vm1, %v4067_v38, 0.0  ;;  %v1251_v3 = vsel %vm1235_vm4, %v4063_v34, 0.0 }
 0x360   :  { %v1192_v5 = vpop.permute.xlu1 %1191  ;;  %v1838_v40 = vpop.permute.xlu0 %1837 }
 0x361   :  { %vm1882_vm2 = vcmp.eq.s32.totalorder %v1838_v40, 1  ;;  %vm1234_vm7 = vcmp.eq.s32.totalorder %v1192_v5, 1 }
 0x362   :  { %v4673_v8 = vsel %vm1882_vm2, %v4494_v39, %v1249_v33  ;;  %v1250_v39 = vsel %vm1234_vm7, %v4072_v43, 0.0 }
 0x364   :  { %v1835_v56 = vpop.permute.xlu1 %1834  ;;  %v1844_v13 = vpop.permute.xlu0 %1843 }
 0x365   :  { %vm1881_vm5 = vcmp.eq.s32.totalorder %v1835_v56, 1  ;;  %vm1884_vm6 = vcmp.eq.s32.totalorder %v1844_v13, 1 }
 0x366   :  { %v4678_v49 = vsel %vm1881_vm5, %v4492_v29, %v1248_v27  ;;  %v4681_v38 = vsel %vm1884_vm6, %v4488_v7, %v1251_v3 }
 0x368   :  { %v1841_v62 = vpop.permute.xlu1 %1840  ;;  %v4683_v36 = vpop.permute.xlu0 %2486 }
 0x369   :  { %vm1883_vm8 = vcmp.eq.s32.totalorder %v1841_v62, 1 }
 0x36a   :  { %v4687_v54 = vsel %vm1883_vm8, %v4500_v45, %v1250_v39 }
 0x36c   :  { %v4689_v35 = vpop.permute.xlu1 %2483  ;;  %v4691_v34 = vpop.permute.xlu0 %2492 }
 0x370   :  { %v4693_v22 = vpop.permute.xlu1 %2489  ;;  %v1201_v29 = vpop.permute.xlu0 %1200 }
 0x371   :  { %vm1237_vm9 = vcmp.eq.s32.totalorder %v1201_v29, 1 }
 0x372   :  { %v1253_v9 = vsel %vm1237_vm9, %v4086_v2, 0.0 }
 0x374   :  { %v1198_v42 = vpop.permute.xlu1 %1197  ;;  %v1207_v11 = vpop.permute.xlu0 %1206 }
 0x375   :  { %vm1236_vm11 = vcmp.eq.s32.totalorder %v1198_v42, 1  ;;  %vm1239_vm12 = vcmp.eq.s32.totalorder %v1207_v11, 1  ;;  %v5172_v42 = vld [vmem:[#allocation11_spill] sm:$0xff] }
 0x376   :  { %v1252_v24 = vsel %vm1236_vm11, %v4084_v0, 0.0  ;;  %v1255_v59 = vsel %vm1239_vm12, %v4128_v58, 0.0  ;;  %vm2446_vm12 = vcmp.eq.s32.totalorder %v4561_v25, 3 }
 0x378   :  { %v1204_v7 = vpop.permute.xlu1 %1203  ;;  %v1850_v31 = vpop.permute.xlu0 %1849 }
 0x379   :  { %vm1886_vm10 = vcmp.eq.s32.totalorder %v1850_v31, 1  ;;  %vm1238_vm15 = vcmp.eq.s32.totalorder %v1204_v7, 1  ;;  %v3213_v7 = vpop.f32.mrf.mxu0  ;;  %v5173_v31 = vld [vmem:[#allocation16_spill] sm:$0xff] }
 0x37a   :  { %v4697_v43 = vsel %vm1886_vm10, %v4583_v15, %v1253_v9  ;;  %v1254_v15 = vsel %vm1238_vm15, %v4126_v57, 0.0  ;;  %vm1800_vm10 = vcmp.eq.s32.totalorder %v4556_v20, 2  ;;  %vm2449_vm15 = vcmp.eq.s32.totalorder %v4556_v20, 3 }
 0x37c   :  { %v1847_v45 = vpop.permute.xlu1 %1846  ;;  %v1856_v47 = vpop.permute.xlu0 %1855 }
 0x37d   :  { %vm1885_vm13 = vcmp.eq.s32.totalorder %v1847_v45, 1  ;;  %vm1888_vm14 = vcmp.eq.s32.totalorder %v1856_v47, 1 }
 0x37e   :  { %v4702_v23 = vsel %vm1885_vm13, %v4581_v41, %v1252_v24  ;;  %v4705_v2 = vsel %vm1888_vm14, %v4641_v55, %v1255_v59 }
 0x380   :  { %v1853_v32 = vpop.permute.xlu1 %1852  ;;  %v4707_v52 = vpop.permute.xlu0 %2498 }
 0x381   :  { %vm1887_vm1 = vcmp.eq.s32.totalorder %v1853_v32, 1  ;;  %v5174_v32 = vld [vmem:[#allocation9_spill] sm:$0xff] }
 0x382   :  { %v4711_v46 = vsel %vm1887_vm1, %v4639_v63, %v1254_v15  ;;  %vm2532_vm1 = vcmp.eq.s32.totalorder %v4693_v22, 1 }
 0x384   :  { %v4713_v0 = vpop.permute.xlu1 %2495  ;;  %v4715_v58 = vpop.permute.xlu0 %2504 }
 0x388   :  { %v4717_v5 = vpop.permute.xlu1 %2501  ;;  %v1213_v41 = vpop.permute.xlu0 %1212 }
 0x389   :  { %vm1241_vm2 = vcmp.eq.s32.totalorder %v1213_v41, 1 }
 0x38a   :  { %v1257_v13 = vsel %vm1241_vm2, %v4136_v6, 0.0  ;;  %vm2533_vm2 = vcmp.eq.s32.totalorder %v4691_v34, 1 }
 0x38c   :  { %v1210_v40 = vpop.permute.xlu1 %1209  ;;  %v1219_v33 = vpop.permute.xlu0 %1218 }
 0x38d   :  { %vm1240_vm4 = vcmp.eq.s32.totalorder %v1210_v40, 1  ;;  %vm1243_vm5 = vcmp.eq.s32.totalorder %v1219_v33, 1  ;;  %v4743_v33 = vld [vmem:[%s5110_s5] ss:$0 sm:$0xff] }
 0x38e   :  { %v1256_v3 = vsel %vm1240_vm4, %v4134_v4, 0.0  ;;  %v1259_v62 = vsel %vm1243_vm5, %v4142_v17, 0.0  ;;  %v449_v4 = vpop.f32.mrf.mxu0  ;;  %v458_v17 = vadd.f32 %v5173_v31, %v3213_v7  ;;  %vm2531_vm4 = vcmp.eq.s32.totalorder %v4683_v36, 1 }
 0x38f   :  { %v450_v45 = vadd.f32 %v5173_v31, %v449_v4  ;;  %vm2536_vm5 = vcmp.eq.s32.totalorder %v4717_v5, 1 }
 0x390   :  { %v1216_v55 = vpop.permute.xlu1 %1215  ;;  %v1862_v56 = vpop.permute.xlu0 %1861 }
 0x391   :  { %vm1890_vm3 = vcmp.eq.s32.totalorder %v1862_v56, 1  ;;  %vm1242_vm8 = vcmp.eq.s32.totalorder %v1216_v55, 1  ;;  %v3214_v9 = vpop.f32.mrf.mxu0 }
 0x392   :  { %v4721_v57 = vsel %vm1890_vm3, %v4649_v18, %v1257_v13  ;;  %v1258_v11 = vsel %vm1242_vm8, %v5172_v42, 0.0  ;;  %v461_v24 = vadd.f32 %v5173_v31, %v3214_v9  ;;  %v3435_v31 = vld [vmem:[%s5112_s7 + $0x38] sm:$0xff]   ;;  %vm2530_vm3 = vcmp.eq.s32.totalorder %v4689_v35, 1 }
 0x393   :  { %5170 = vst [vmem:[#allocation33_spill] sm:$0xff] %v4721_v57  ;;  %v452_v59 = vpop.f32.mrf.mxu0  ;;  %3323 = vmatprep.subr.bf16.mxu0 %v3435_v31  ;;  %vm2535_vm8 = vcmp.eq.s32.totalorder %v4707_v52, 1 }
 0x394   :  { %v1859_v63 = vpop.permute.xlu1 %1858  ;;  %v1868_v27 = vpop.permute.xlu0 %1867  ;;  %v453_v55 = vadd.f32 %v4743_v33, %v452_v59  ;;  %3324 = vmatpush3.bf16.msra.mxu0 %v3435_v31 }
 0x395   :  { %vm1889_vm6 = vcmp.eq.s32.totalorder %v1859_v63, 1  ;;  %vm1892_vm7 = vcmp.eq.s32.totalorder %v1868_v27, 1 }
 0x396   :  { %v4726_v39 = vsel %vm1889_vm6, %v4647_v12, %v1256_v3  ;;  %v4729_v6 = vsel %vm1892_vm7, %v4655_v1, %v1259_v62  ;;  %vm2537_vm6 = vcmp.eq.s32.totalorder %v4715_v58, 1  ;;  %vm2534_vm7 = vcmp.eq.s32.totalorder %v4713_v0, 1 }
 0x397   :  { %5171 = vst [vmem:[#allocation34_spill] sm:$0xff] %v4726_v39 }
 0x398   :  { %v1865_v29 = vpop.permute.xlu1 %1864 }
 0x399   :  { %vm1891_vm9 = vcmp.eq.s32.totalorder %v1865_v29, 1 }
 0x39a   :  { %v4733_v18 = vsel %vm1891_vm9, %v4653_v16, %v1258_v11  ;;  %v5175_v11 = vld [vmem:[#allocation10_spill] sm:$0xff] }
 0x3cc   :  { %v3309_v47 = vpop.f32.mrf.mxu1 }
 0x3cd   :  { %v2132_v12 = vadd.f32 %v3309_v47, %v458_v17  ;;  %v3436_v47 = vld [vmem:[%s5112_s7 + $0x30] sm:$0xff]  }
 0x3ce   :  { %v2067_v1 = vpop.f32.mrf.mxu1  ;;  %3325 = vmatprep.subr.bf16.mxu0 %v3436_v47 }
 0x3cf   :  { %v2148_v15 = vmul.f32 %v2132_v12, %v5174_v32  ;;  %v2130_v41 = vadd.f32 %v2067_v1, %v450_v45  ;;  %3326 = vmatpush3.bf16.msra.mxu0 %v3436_v47 }
 0x3d0   :  { %v3310_v40 = vpop.f32.mrf.mxu1 }
 0x3d1   :  { %3580 = vtanh.f32 %v2148_v15  ;;  %v2146_v16 = vmul.f32 %v2130_v41, %v5174_v32  ;;  %v2133_v56 = vadd.f32 %v3310_v40, %v461_v24  ;;  %v3437_v24 = vld [vmem:[%s5112_s7 + $0x28] sm:$0xff]   ;;  %v3438_v15 = vld [vmem:[%s5112_s7 + $0x20] sm:$0xff]   ;;  %v3439_v40 = vld [vmem:[%s5112_s7 + $0x18] sm:$0xff]  }
 0x3d2   :  { %v2070_v13 = vpop.f32.mrf.mxu1  ;;  %3327 = vmatprep.subr.bf16.mxu0 %v3437_v24 }
 0x3d3   :  { %3582 = vtanh.f32 %v2146_v16  ;;  %v2149_v63 = vmul.f32 %v2133_v56, %v5174_v32  ;;  %v2131_v27 = vadd.f32 %v2070_v13, %v453_v55  ;;  %3328 = vmatpush3.bf16.msra.mxu0 %v3437_v24  ;;  %v3440_v16 = vld [vmem:[%s5112_s7 + $0x10] sm:$0xff]   ;;  %v3217_v55 = vpop.f32.mrf.mxu0  ;;  %v3441_v56 = vld [vmem:[%s5112_s7 + $0x8] sm:$0xff]  }
 0x3d4   :  { %3329 = vmatprep.subr.bf16.mxu0 %v3438_v15 }
 0x3d5   :  { %3584 = vtanh.f32 %v2149_v63  ;;  %v2147_v3 = vmul.f32 %v2131_v27, %v5174_v32  ;;  %v465_v13 = vpop.f32.mrf.mxu0  ;;  %v3442_v63 = vld [vmem:[%s5112_s7] sm:$0xff]  }
 0x3d7   :  { %3586 = vtanh.f32 %v2147_v3  ;;  %3330 = vmatpush3.bf16.msra.mxu0 %v3438_v15  ;;  %v3218_v27 = vpop.f32.mrf.mxu0  ;;  %v474_v3 = vadd.f32 %v4743_v33, %v3217_v55 }
 0x3d8   :  { %3331 = vmatprep.subr.bf16.mxu0 %v3439_v40 }
 0x3db   :  { %3332 = vmatpush3.bf16.msra.mxu0 %v3439_v40 }
 0x3dc   :  { %3333 = vmatprep.subr.bf16.mxu0 %v3440_v16 }
 0x3de   :  { %v3581_v62 = vpop.eup %3580 }
 0x3df   :  { %v2180_v29 = vmul.f32 %v3581_v62, %v5174_v32  ;;  %3334 = vmatpush3.bf16.msra.mxu0 %v3440_v16  ;;  %v468_v62 = vpop.f32.mrf.mxu0 }
 0x3e0   :  { %v3583_v42 = vpop.eup %3582  ;;  %3335 = vmatprep.subr.bf16.mxu0 %v3441_v56  ;;  %v469_v55 = vadd.f32 %v4743_v33, %v468_v62 }
 0x3e1   :  { %v4750_v7 = vadd.f32 %v2180_v29, %v5175_v11  ;;  %v2178_v4 = vmul.f32 %v3583_v42, %v5174_v32  ;;  %v466_v42 = vadd.f32 %v4743_v33, %v465_v13 }
 0x3e2   :  { %v3585_v17 = vpop.eup %3584 }
 0x3e3   :  { %2278 = vrot.lane.b32.xlu1 %v4750_v7, %s3672_s25  ;;  %2214 = vrot.lane.b32.xlu0 %v4750_v7, %s3670_s19  ;;  %v4761_v9 = vadd.f32 %v2178_v4, %v5175_v11  ;;  %v2181_v45 = vmul.f32 %v3585_v17, %v5174_v32  ;;  %v3221_v17 = vpop.f32.mrf.mxu0 }
 0x3e4   :  { %v3587_v1 = vpop.eup %3586  ;;  %3336 = vmatpush3.bf16.msra.mxu0 %v3441_v56 }
 0x3e5   :  { %v4772_v12 = vadd.f32 %v2181_v45, %v5175_v11  ;;  %v2179_v59 = vmul.f32 %v3587_v1, %v5174_v32  ;;  %3337 = vmatprep.subr.bf16.mxu0 %v3442_v63  ;;  %v477_v45 = vadd.f32 %v4743_v33, %v3218_v27  ;;  %v481_v16 = vpop.f32.mrf.mxu0 }
 0x3e7   :  { %2246 = vrot.lane.b32.xlu0 %v4750_v7, %s3671_s22  ;;  %2274 = vrot.lane.b32.xlu1 %v4761_v9, %s3672_s25  ;;  %v4790_v41 = vadd.f32 %v2179_v59, %v5175_v11 }
 0x3e8   :  { %3338 = vmatpush3.bf16.msra.mxu0 %v3442_v63 }
 0x3eb   :  { %2210 = vrot.lane.b32.xlu0 %v4761_v9, %s3670_s19  ;;  %2216 = vrot.lane.b32.xlu1 %v4772_v12, %s3670_s19 }
 0x3ef   :  { %2242 = vrot.lane.b32.xlu0 %v4761_v9, %s3671_s22  ;;  %2248 = vrot.lane.b32.xlu1 %v4772_v12, %s3671_s22 }
 0x3f3   :  { %2280 = vrot.lane.b32.xlu0 %v4772_v12, %s3672_s25  ;;  %2212 = vrot.lane.b32.xlu1 %v4790_v41, %s3670_s19 }
 0x3f7   :  { %2276 = vrot.lane.b32.xlu0 %v4790_v41, %s3672_s25  ;;  %2244 = vrot.lane.b32.xlu1 %v4790_v41, %s3671_s22 }
 0x404   :  { %v3313_v29 = vpop.f32.mrf.mxu1 }
 0x405   :  { %v2136_v4 = vadd.f32 %v3313_v29, %v474_v3  ;;  %v3222_v3 = vpop.f32.mrf.mxu0  ;;  %v490_v29 = vadd.f32 %v4743_v33, %v3221_v17 }
 0x406   :  { %v2083_v31 = vpop.f32.mrf.mxu1 }
 0x407   :  { %v2152_v47 = vmul.f32 %v2136_v4, %v5174_v32  ;;  %v2134_v24 = vadd.f32 %v2083_v31, %v466_v42  ;;  %v493_v4 = vadd.f32 %v4743_v33, %v3222_v3 }
 0x408   :  { %v3314_v1 = vpop.f32.mrf.mxu1 }
 0x409   :  { %3588 = vtanh.f32 %v2152_v47  ;;  %v2150_v59 = vmul.f32 %v2134_v24, %v5174_v32  ;;  %v2137_v15 = vadd.f32 %v3314_v1, %v477_v45 }
 0x40a   :  { %v2086_v40 = vpop.f32.mrf.mxu1 }
 0x40b   :  { %3590 = vtanh.f32 %v2150_v59  ;;  %v2153_v56 = vmul.f32 %v2137_v15, %v5174_v32  ;;  %v2135_v63 = vadd.f32 %v2086_v40, %v469_v55  ;;  %v484_v55 = vpop.f32.mrf.mxu0 }
 0x40c   :  { %v3317_v13 = vpop.f32.mrf.mxu1 }
 0x40d   :  { %3592 = vtanh.f32 %v2153_v56  ;;  %v2151_v42 = vmul.f32 %v2135_v63, %v5174_v32  ;;  %v2140_v45 = vadd.f32 %v3317_v13, %v490_v29  ;;  %v482_v13 = vadd.f32 %v4743_v33, %v481_v16 }
 0x40e   :  { %v2099_v27 = vpop.f32.mrf.mxu1  ;;  %v485_v63 = vadd.f32 %v4743_v33, %v484_v55 }
 0x40f   :  { %3594 = vtanh.f32 %v2151_v42  ;;  %v2156_v59 = vmul.f32 %v2140_v45, %v5174_v32 }
 0x410   :  { %v3318_v31 = vpop.f32.mrf.mxu1 }
 0x411   :  { %v2141_v47 = vadd.f32 %v3318_v31, %v493_v4  ;;  %3596 = vtanh.f32 %v2156_v59  ;;  %v2138_v4 = vadd.f32 %v2099_v27, %v482_v13 }
 0x412   :  { %v2102_v42 = vpop.f32.mrf.mxu1 }
 0x413   :  { %v2157_v15 = vmul.f32 %v2141_v47, %v5174_v32  ;;  %v2139_v31 = vadd.f32 %v2102_v42, %v485_v63  ;;  %v3225_v47 = vpop.f32.mrf.mxu0 }
 0x414   :  { %v3321_v27 = vpop.f32.mrf.mxu1 }
 0x415   :  { %3598 = vtanh.f32 %v2157_v15  ;;  %v497_v59 = vpop.f32.mrf.mxu0 }
 0x416   :  { %v3589_v24 = vpop.eup %3588  ;;  %v2115_v63 = vpop.f32.mrf.mxu1 }
 0x417   :  { %v2184_v62 = vmul.f32 %v3589_v24, %v5174_v32  ;;  %v2154_v24 = vmul.f32 %v2138_v4, %v5174_v32  ;;  %v3226_v13 = vpop.f32.mrf.mxu0 }
 0x418   :  { %v3591_v1 = vpop.eup %3590  ;;  %v509_v42 = vadd.f32 %v4743_v33, %v3226_v13 }
 0x419   :  { %v4826_v40 = vadd.f32 %v2184_v62, %v5175_v11  ;;  %v2182_v56 = vmul.f32 %v3591_v1, %v5174_v32  ;;  %v2155_v62 = vmul.f32 %v2139_v31, %v5174_v32  ;;  %3600 = vtanh.f32 %v2154_v24 }
 0x41a   :  { %v3593_v17 = vpop.eup %3592 }
 0x41b   :  { %2286 = vrot.lane.b32.xlu1 %v4826_v40, %s3672_s25  ;;  %2222 = vrot.lane.b32.xlu0 %v4826_v40, %s3670_s19  ;;  %v4836_v3 = vadd.f32 %v2182_v56, %v5175_v11  ;;  %v2185_v29 = vmul.f32 %v3593_v17, %v5174_v32  ;;  %v506_v17 = vadd.f32 %v4743_v33, %v3225_v47  ;;  %3602 = vtanh.f32 %v2155_v62 }
 0x41c   :  { %v3595_v45 = vpop.eup %3594  ;;  %v498_v47 = vadd.f32 %v4743_v33, %v497_v59 }
 0x41d   :  { %v4844_v16 = vadd.f32 %v2185_v29, %v5175_v11  ;;  %v2183_v1 = vmul.f32 %v3595_v45, %v5174_v32  ;;  %v2144_v29 = vadd.f32 %v3321_v27, %v506_v17  ;;  %v3322_v45 = vpop.f32.mrf.mxu1 }
 0x41e   :  { %v3597_v15 = vpop.eup %3596  ;;  %v2145_v62 = vadd.f32 %v3322_v45, %v509_v42  ;;  %v2142_v17 = vadd.f32 %v2115_v63, %v498_v47  ;;  %v4903_v45 = vpop.permute.xlu1 %2507 }
 0x41f   :  { %2254 = vrot.lane.b32.xlu0 %v4826_v40, %s3671_s22  ;;  %2282 = vrot.lane.b32.xlu1 %v4836_v3, %s3672_s25  ;;  %v4859_v55 = vadd.f32 %v2183_v1, %v5175_v11  ;;  %v2188_v4 = vmul.f32 %v3597_v15, %v5174_v32  ;;  %v2160_v24 = vmul.f32 %v2144_v29, %v5174_v32  ;;  %v500_v15 = vpop.f32.mrf.mxu0  ;;  %v4889_v29 = vld [vmem:[%s5111_s6] sm:$0xff]  }
 0x420   :  { %v501_v59 = vadd.f32 %v4743_v33, %v500_v15  ;;  %v2161_v13 = vmul.f32 %v2145_v62, %v5174_v32  ;;  %v2158_v63 = vmul.f32 %v2142_v17, %v5174_v32  ;;  %3373 = vmatprep.subr.bf16.mxu1 %v4889_v29  ;;  %v3444_v33 = vld [vmem:[%s5106_s1 + $0x10] sm:$0xff]   ;;  %3355 = vmatprep.subr.bf16.mxu0 %v4889_v29  ;;  %v3445_v15 = vld [vmem:[%s5106_s1 + $0x18] sm:$0xff]  }
 0x421   :  { %v4875_v1 = vadd.f32 %v2188_v4, %v5175_v11  ;;  %3604 = vtanh.f32 %v2160_v24  ;;  %v2118_v4 = vpop.f32.mrf.mxu1  ;;  %3374 = vmatpush3.bf16.msra.mxu1 %v4889_v29  ;;  %3361 = vmatprep.mubr.msk.bf16.mxu1 %vm214_vm0, %v3444_v33 }
 0x422   :  { %v3599_v56 = vpop.eup %3598  ;;  %3606 = vtanh.f32 %v2161_v13  ;;  %v2143_v47 = vadd.f32 %v2118_v4, %v501_v59 }
 0x423   :  { %2218 = vrot.lane.b32.xlu0 %v4836_v3, %s3670_s19  ;;  %2224 = vrot.lane.b32.xlu1 %v4844_v16, %s3670_s19  ;;  %v2189_v31 = vmul.f32 %v3599_v56, %v5174_v32  ;;  %3608 = vtanh.f32 %v2158_v63 }
 0x424   :  { %3362 = vmatmul.mubr.msk.bf16.vlgmr.msra.gmra.mxu1 %vm214_vm0, %v3445_v15  ;;  %v2159_v17 = vmul.f32 %v2143_v47, %v5174_v32 }
 0x425   :  { %v4878_v27 = vadd.f32 %v2189_v31, %v5175_v11  ;;  %v4901_v31 = vpop.permute.xlu0 %2510 }
 0x426   :  { %v3601_v56 = vpop.eup %3600  ;;  %3610 = vtanh.f32 %v2159_v17 }
 0x427   :  { %2250 = vrot.lane.b32.xlu0 %v4836_v3, %s3671_s22  ;;  %2256 = vrot.lane.b32.xlu1 %v4844_v16, %s3671_s22  ;;  %v2186_v24 = vmul.f32 %v3601_v56, %v5174_v32 }
 0x428   :  { %v3603_v42 = vpop.eup %3602 }
 0x429   :  { %v2187_v62 = vmul.f32 %v3603_v42, %v5174_v32  ;;  %v4919_v56 = vadd.f32 %v2186_v24, %v5175_v11  ;;  %v4924_v13 = vpop.permute.xlu0 %2516  ;;  %v4926_v42 = vpop.permute.xlu1 %2513 }
 0x42a   :  { %vm2540_vm9 = vcmp.eq.s32.totalorder %v4926_v42, 1 }
 0x42b   :  { %2288 = vrot.lane.b32.xlu0 %v4844_v16, %s3672_s25  ;;  %2220 = vrot.lane.b32.xlu1 %v4859_v55, %s3670_s19  ;;  %v4922_v59 = vadd.f32 %v2187_v62, %v5175_v11  ;;  %v1832_v62 = vsel %vm1800_vm10, 1, %v5137_v61  ;;  %vm2541_vm10 = vcmp.eq.s32.totalorder %v4924_v13, 1  ;;  %v5191_v13 = vld [vmem:[#allocation34_spill] sm:$0xff] }
 0x42d   :  { %v4936_v63 = vpop.permute.xlu0 %1224  ;;  %v4938_v33 = vpop.permute.xlu1 %1221 }
 0x42e   :  { %v3605_v4 = vpop.eup %3604  ;;  %5176 = vst [vmem:[#allocation11_spill] sm:$0xff] %v4936_v63  ;;  %5177 = vst [vmem:[#allocation16_spill] sm:$0xff] %v4938_v33  ;;  %v5185_v63 = vld [vmem:[#allocation19_spill] sm:$0xff] }
 0x42f   :  { %2284 = vrot.lane.b32.xlu0 %v4859_v55, %s3672_s25  ;;  %2252 = vrot.lane.b32.xlu1 %v4859_v55, %s3671_s22  ;;  %v2192_v47 = vmul.f32 %v3605_v4, %v5174_v32  ;;  %v3607_v24 = vpop.eup %3606  ;;  %v3446_v4 = vld [vmem:[%s5106_s1 + $0x20] sm:$0xff]  }
 0x430   :  { %v2193_v17 = vmul.f32 %v3607_v24, %v5174_v32  ;;  %v3609_v26 = vpop.eup %3608  ;;  %v3447_v24 = vld [vmem:[%s5106_s1 + $0x28] sm:$0xff]   ;;  %3365 = vmatprep.mubr.msk.bf16.mxu1 %vm214_vm0, %v3446_v4 }
 0x431   :  { %v4948_v15 = vadd.f32 %v2192_v47, %v5175_v11  ;;  %v4951_v28 = vpop.permute.xlu0 %1230  ;;  %v4953_v53 = vpop.permute.xlu1 %1227  ;;  %v2190_v47 = vmul.f32 %v3609_v26, %v5174_v32  ;;  %3366 = vmatmul.mubr.msk.bf16.gmra.mxu1 %vm214_vm0, %v3447_v24  ;;  %v5182_v24 = vld [vmem:[#allocation24_spill] sm:$0xff] }
 0x432   :  { %5178 = vst [vmem:[#allocation9_spill] sm:$0xff] %v4951_v28  ;;  %5179 = vst [vmem:[#allocation10_spill] sm:$0xff] %v4953_v53  ;;  %v4961_v61 = vadd.f32 %v2193_v17, %v5175_v11  ;;  %vm1799_vm11 = vcmp.eq.s32.totalorder %v5182_v24, 2  ;;  %vm2448_vm14 = vcmp.eq.s32.totalorder %v5182_v24, 3 }
 0x433   :  { %2230 = vrot.lane.b32.xlu1 %v4875_v1, %s3670_s19  ;;  %2232 = vrot.lane.b32.xlu0 %v4878_v27, %s3670_s19  ;;  %v3611_v51 = vpop.eup %3610  ;;  %v4978_v26 = vadd.f32 %v2190_v47, %v5175_v11 }
 0x434   :  { %v2191_v53 = vmul.f32 %v3611_v51, %v5174_v32  ;;  %v5183_v51 = vmov 0  }
 0x435   :  { %v4975_v17 = vpop.permute.xlu1 %1870  ;;  %v1831_v32 = vsel %vm1799_vm11, 1, %v5183_v51  ;;  %v2478_v60 = vsel %vm2446_vm12, 1, %v5183_v51  ;;  %v2480_v25 = vsel %vm2448_vm14, 1, %v5183_v51  ;;  %vm2538_vm11 = vcmp.eq.s32.totalorder %v4903_v45, 1 }
 0x436   :  { %5181 = vst [vmem:[#allocation36_spill] sm:$0xff] %v4975_v17  ;;  %v4986_v33 = vadd.f32 %v2191_v53, %v5175_v11  ;;  %vm2539_vm12 = vcmp.eq.s32.totalorder %v4901_v31, 1 }
 0x437   :  { %2262 = vrot.lane.b32.xlu1 %v4875_v1, %s3671_s22  ;;  %2264 = vrot.lane.b32.xlu0 %v4878_v27, %s3671_s22 }
 0x43b   :  { %2294 = vrot.lane.b32.xlu1 %v4875_v1, %s3672_s25  ;;  %2296 = vrot.lane.b32.xlu0 %v4878_v27, %s3672_s25 }
 0x43f   :  { %2226 = vrot.lane.b32.xlu1 %v4919_v56, %s3670_s19  ;;  %2228 = vrot.lane.b32.xlu0 %v4922_v59, %s3670_s19 }
 0x443   :  { %2258 = vrot.lane.b32.xlu1 %v4919_v56, %s3671_s22  ;;  %2260 = vrot.lane.b32.xlu0 %v4922_v59, %s3671_s22 }
 0x447   :  { %2290 = vrot.lane.b32.xlu1 %v4919_v56, %s3672_s25  ;;  %2292 = vrot.lane.b32.xlu0 %v4922_v59, %s3672_s25 }
 0x44b   :  { %1879 = vperm.xlu0 %3384, %v1832_v62   ;;  %2238 = vrot.lane.b32.xlu1 %v4948_v15, %s3670_s19  ;;  %v4973_v62 = vpop.permute.xlu0 %1873 }
 0x44c   :  { %5180 = vst [vmem:[#allocation35_spill] sm:$0xff] %v4973_v62  ;;  %v5184_v62 = vld [vmem:[#allocation23_spill] sm:$0xff] }
 0x44d   :  { %vm2447_vm13 = vcmp.eq.s32.totalorder %v5184_v62, 3 }
 0x44e   :  { %v2479_v50 = vsel %vm2447_vm13, 1, %v5183_v51 }
 0x44f   :  { %2270 = vrot.lane.b32.xlu1 %v4948_v15, %s3671_s22  ;;  %2240 = vrot.lane.b32.xlu0 %v4961_v61, %s3670_s19 }
 0x453   :  { %2234 = vrot.lane.b32.xlu1 %v4978_v26, %s3670_s19  ;;  %2272 = vrot.lane.b32.xlu0 %v4961_v61, %s3671_s22 }
 0x455   :  { %v2279_v4 = vpop.permute.xlu1 %2278  ;;  %v2215_v28 = vpop.permute.xlu0 %2214 }
 0x456   :  { %v2324_v10 = vmul.f32 %v2215_v28, %v5185_v63  ;;  %v2481_v28 = vsel %vm2449_vm15, 1, %v5183_v51 }
 0x457   :  { %2266 = vrot.lane.b32.xlu1 %v4978_v26, %s3671_s22  ;;  %2236 = vrot.lane.b32.xlu0 %v4986_v33, %s3670_s19 }
 0x459   :  { %v2275_v47 = vpop.permute.xlu1 %2274  ;;  %v2247_v17 = vpop.permute.xlu0 %2246 }
 0x45a   :  { %v2340_v53 = vmul.f32 %v2247_v17, %v4750_v7  ;;  %v5187_v17 = vld [vmem:[#allocation18_spill] sm:$0xff] }
 0x45b   :  { %1876 = vperm.xlu1 %3385, %v1831_v32   ;;  %2268 = vrot.lane.b32.xlu0 %v4986_v33, %s3671_s22 }
 0x45c   :  { %v2356_v11 = vadd.f32 %v2340_v53, %v2324_v10  ;;  %v5186_v10 = vld [vmem:[#allocation17_spill] sm:$0xff] }
 0x45d   :  { %v2217_v48 = vpop.permute.xlu1 %2216  ;;  %v2211_v57 = vpop.permute.xlu0 %2210 }
 0x45e   :  { %3612 = vtanh.f32 %v2356_v11  ;;  %v2325_v62 = vmul.f32 %v2217_v48, %v5186_v10  ;;  %v2322_v32 = vmul.f32 %v2211_v57, %v5187_v17  ;;  %v5188_v48 = vld [vmem:[#allocation20_spill] sm:$0xff]  ;;  %v3448_v11 = vld [vmem:[%s5106_s1 + $0x30] sm:$0xff]  }
 0x45f   :  { %2519 = vperm.xlu1 %3385, %v2478_v60   ;;  %2522 = vperm.xlu0 %3384, %v2479_v50  }
 0x460   :  { %3369 = vmatprep.mubr.msk.bf16.mxu1 %vm214_vm0, %v3448_v11 }
 0x461   :  { %v2249_v7 = vpop.permute.xlu1 %2248  ;;  %v2243_v63 = vpop.permute.xlu0 %2242 }
 0x462   :  { %v2341_v53 = vmul.f32 %v2249_v7, %v4772_v12  ;;  %v2338_v39 = vmul.f32 %v2243_v63, %v4761_v9 }
 0x463   :  { %2525 = vperm.xlu1 %3385, %v2480_v25   ;;  %2528 = vperm.xlu0 %3384, %v2481_v28  }
 0x464   :  { %v2357_v20 = vadd.f32 %v2341_v53, %v2325_v62  ;;  %v2354_v24 = vadd.f32 %v2338_v39, %v2322_v32 }
 0x465   :  { %v2213_v60 = vpop.permute.xlu1 %2212 }
 0x466   :  { %3614 = vtanh.f32 %v2357_v20  ;;  %v2323_v57 = vmul.f32 %v2213_v60, %v5188_v48 }
 0x467   :  { %3616 = vtanh.f32 %v2354_v24  ;;  %2298 = vrot.lane.b32.xlu1 %v4978_v26, %s3672_s25  ;;  %2300 = vrot.lane.b32.xlu0 %v4986_v33, %s3672_s25 }
 0x469   :  { %v2245_v50 = vpop.permute.xlu1 %2244 }
 0x46a   :  { %v2339_v12 = vmul.f32 %v2245_v50, %v4790_v41  ;;  %v3449_v41 = vld [vmem:[%s5106_s1 + $0x38] sm:$0xff]  }
 0x46b   :  { %v3613_v51 = vpop.eup %3612  ;;  %2302 = vrot.lane.b32.xlu1 %v4948_v15, %s3672_s25  ;;  %2304 = vrot.lane.b32.xlu0 %v4961_v61, %s3672_s25 }
 0x46c   :  { %v2388_v39 = vmul.f32 %v3613_v51, %v2279_v4  ;;  %v2355_v9 = vadd.f32 %v2339_v12, %v2323_v57  ;;  %3370 = vmatmul.mubr.msk.bf16.gmra.mxu1 %vm214_vm0, %v3449_v41  ;;  %v2281_v4 = vpop.permute.xlu0 %2280  ;;  %v5189_v51 = vld [vmem:[#allocation21_spill] sm:$0xff] }
 0x46e   :  { %v2548_v25 = vsel %vm2532_vm1, %v2388_v39, %v4687_v54  ;;  %3618 = vtanh.f32 %v2355_v9 }
 0x470   :  { %v2277_v32 = vpop.permute.xlu0 %2276 }
 0x473   :  { %v3615_v28 = vpop.eup %3614 }
 0x474   :  { %v3617_v7 = vpop.eup %3616  ;;  %v2389_v63 = vmul.f32 %v3615_v28, %v2281_v4  ;;  %v5190_v4 = vld [vmem:[#allocation22_spill] sm:$0xff] }
 0x475   :  { %v2386_v22 = vmul.f32 %v3617_v7, %v2275_v47 }
 0x476   :  { %v2549_v54 = vsel %vm2533_vm2, %v2389_v63, %v4681_v38 }
 0x477   :  { %v2613_v10 = vpack.c.bf16 %v2549_v54, %v2548_v25  ;;  %v2546_v62 = vsel %vm2530_vm3, %v2386_v22, %v4678_v49 }
 0x47b   :  { %v3619_v17 = vpop.eup %3618 }
 0x47c   :  { %v2387_v53 = vmul.f32 %v3619_v17, %v2277_v32 }
 0x47e   :  { %v2547_v20 = vsel %vm2531_vm4, %v2387_v53, %v4673_v8 }
 0x47f   :  { %v2612_v24 = vpack.c.bf16 %v2547_v20, %v2546_v62 }
 0x481   :  { %3339 = vmatprep.mubr.bf16.mxu0 %v2612_v24 }
 0x482   :  { %3340 = vmatmul.mubr.bf16.vlgmr.msra.gmra.mxu0 %v2613_v10 }
 0x483   :  { %3356 = vmatpush3.bf16.msra.mxu0 %v4889_v29 }
 0x48d   :  { %v2287_v34 = vpop.permute.xlu1 %2286  ;;  %v2223_v47 = vpop.permute.xlu0 %2222 }
 0x48e   :  { %v2328_v38 = vmul.f32 %v2223_v47, %v4593_v44 }
 0x491   :  { %v2283_v35 = vpop.permute.xlu1 %2282  ;;  %v2255_v60 = vpop.permute.xlu0 %2254 }
 0x492   :  { %v2344_v49 = vmul.f32 %v2255_v60, %v4826_v40 }
 0x494   :  { %v2360_v50 = vadd.f32 %v2344_v49, %v2328_v38 }
 0x495   :  { %v2225_v48 = vpop.permute.xlu1 %2224  ;;  %v2219_v57 = vpop.permute.xlu0 %2218 }
 0x496   :  { %3620 = vtanh.f32 %v2360_v50  ;;  %v2329_v8 = vmul.f32 %v2225_v48, %v4596_v37  ;;  %v2326_v39 = vmul.f32 %v2219_v57, %v5189_v51 }
 0x499   :  { %v2257_v36 = vpop.permute.xlu1 %2256  ;;  %v2251_v12 = vpop.permute.xlu0 %2250 }
 0x49a   :  { %v2345_v29 = vmul.f32 %v2257_v36, %v4844_v16  ;;  %v2342_v9 = vmul.f32 %v2251_v12, %v4836_v3 }
 0x49c   :  { %v2361_v11 = vadd.f32 %v2345_v29, %v2329_v8  ;;  %v2358_v25 = vadd.f32 %v2342_v9, %v2326_v39 }
 0x49d   :  { %v2221_v41 = vpop.permute.xlu1 %2220  ;;  %v2289_v44 = vpop.permute.xlu0 %2288 }
 0x49e   :  { %3622 = vtanh.f32 %v2361_v11  ;;  %v2327_v7 = vmul.f32 %v2221_v41, %v5190_v4 }
 0x49f   :  { %3624 = vtanh.f32 %v2358_v25 }
 0x4a1   :  { %v2253_v40 = vpop.permute.xlu1 %2252  ;;  %v2285_v28 = vpop.permute.xlu0 %2284 }
 0x4a2   :  { %v2343_v63 = vmul.f32 %v2253_v40, %v4859_v55 }
 0x4a3   :  { %v3621_v22 = vpop.eup %3620 }
 0x4a4   :  { %v2359_v37 = vadd.f32 %v2343_v63, %v2327_v7  ;;  %v2392_v54 = vmul.f32 %v3621_v22, %v2287_v34 }
 0x4a5   :  { %v2231_v16 = vpop.permute.xlu1 %2230  ;;  %v2233_v10 = vpop.permute.xlu0 %2232 }
 0x4a6   :  { %3626 = vtanh.f32 %v2359_v37  ;;  %v2552_v3 = vsel %vm2536_vm5, %v2392_v54, %v4711_v46  ;;  %v2332_v32 = vmul.f32 %v2231_v16, %v4613_v30  ;;  %v2333_v53 = vmul.f32 %v2233_v10, %v4616_v19 }
 0x4a9   :  { %v2263_v62 = vpop.permute.xlu1 %2262  ;;  %v2265_v17 = vpop.permute.xlu0 %2264 }
 0x4aa   :  { %v2348_v20 = vmul.f32 %v2263_v62, %v4875_v1  ;;  %v2349_v55 = vmul.f32 %v2265_v17, %v4878_v27  ;;  %v5193_v62 = vld [vmem:[#allocation26_spill] sm:$0xff] }
 0x4ab   :  { %v3623_v24 = vpop.eup %3622 }
 0x4ac   :  { %v3625_v47 = vpop.eup %3624  ;;  %v2393_v34 = vmul.f32 %v3623_v24, %v2289_v44  ;;  %v2364_v60 = vadd.f32 %v2348_v20, %v2332_v32  ;;  %v2365_v5 = vadd.f32 %v2349_v55, %v2333_v53  ;;  %v5194_v32 = vld [vmem:[#allocation25_spill] sm:$0xff]  ;;  %v5195_v55 = vld [vmem:[#allocation27_spill] sm:$0xff] }
 0x4ad   :  { %v2295_v38 = vpop.permute.xlu1 %2294  ;;  %v2297_v49 = vpop.permute.xlu0 %2296  ;;  %v2390_v46 = vmul.f32 %v3625_v47, %v2283_v35 }
 0x4ae   :  { %3628 = vtanh.f32 %v2364_v60  ;;  %v2553_v30 = vsel %vm2537_vm6, %v2393_v34, %v4705_v2 }
 0x4af   :  { %3630 = vtanh.f32 %v2365_v5  ;;  %v2550_v19 = vsel %vm2534_vm7, %v2390_v46, %v4702_v23  ;;  %v2615_v1 = vpack.c.bf16 %v2553_v30, %v2552_v3 }
 0x4b1   :  { %v2227_v27 = vpop.permute.xlu1 %2226  ;;  %v2229_v50 = vpop.permute.xlu0 %2228 }
 0x4b2   :  { %v2330_v58 = vmul.f32 %v2227_v27, %v4604_v21  ;;  %v2331_v35 = vmul.f32 %v2229_v50, %v4608_v14 }
 0x4b3   :  { %v3627_v48 = vpop.eup %3626 }
 0x4b4   :  { %v2391_v57 = vmul.f32 %v3627_v48, %v2285_v28  ;;  %v5198_v48 = vld [vmem:[#allocation16_spill] sm:$0xff] }
 0x4b5   :  { %v2259_v36 = vpop.permute.xlu1 %2258  ;;  %v2261_v12 = vpop.permute.xlu0 %2260  ;;  %vm1244_vm14 = vcmp.eq.s32.totalorder %v5198_v48, 1 }
 0x4b6   :  { %v2346_v0 = vmul.f32 %v2259_v36, %v4919_v56  ;;  %v2347_v2 = vmul.f32 %v2261_v12, %v4922_v59  ;;  %v2551_v8 = vsel %vm2535_vm8, %v2391_v57, %v4697_v43  ;;  %v5199_v57 = vld [vmem:[#allocation9_spill] sm:$0xff] }
 0x4b7   :  { %v2614_v23 = vpack.c.bf16 %v2551_v8, %v2550_v19  ;;  %vm1247_vm15 = vcmp.eq.s32.totalorder %v5199_v57, 1  ;;  %v5201_v12 = vld [vmem:[#allocation13_spill] sm:$0xff] }
 0x4b8   :  { %v2362_v51 = vadd.f32 %v2346_v0, %v2330_v58  ;;  %v2363_v39 = vadd.f32 %v2347_v2, %v2331_v35  ;;  %v5200_v58 = vld [vmem:[#allocation10_spill] sm:$0xff]  ;;  %v5202_v2 = vld [vmem:[#allocation12_spill] sm:$0xff] }
 0x4b9   :  { %v2291_v29 = vpop.permute.xlu1 %2290  ;;  %3343 = vmatprep.mubr.bf16.mxu0 %v2614_v23  ;;  %v2293_v41 = vpop.permute.xlu0 %2292  ;;  %vm1246_vm1 = vcmp.eq.s32.totalorder %v5200_v58, 1  ;;  %v1260_v8 = vsel %vm1244_vm14, %v5202_v2, 0.0  ;;  %v5203_v23 = vld [vmem:[#allocation15_spill] sm:$0xff] }
 0x4ba   :  { %3632 = vtanh.f32 %v2362_v51  ;;  %3344 = vmatmul.mubr.bf16.gmra.mxu0 %v2615_v1  ;;  %v5197_v1 = vld [vmem:[#allocation11_spill] sm:$0xff]  ;;  %v1263_v51 = vsel %vm1247_vm15, %v5203_v23, 0.0 }
 0x4bb   :  { %v3629_v52 = vpop.eup %3628  ;;  %3634 = vtanh.f32 %v2363_v39  ;;  %vm1245_vm13 = vcmp.eq.s32.totalorder %v5197_v1, 1  ;;  %v5204_v39 = vld [vmem:[#allocation14_spill] sm:$0xff] }
 0x4bc   :  { %v3631_v21 = vpop.eup %3630  ;;  %v2396_v9 = vmul.f32 %v3629_v52, %v2295_v38  ;;  %v5196_v38 = vld [vmem:[#allocation28_spill] sm:$0xff]  ;;  %v1261_v35 = vsel %vm1245_vm13, %v5201_v12, 0.0  ;;  %v5205_v52 = vld [vmem:[#allocation35_spill] sm:$0xff] }
 0x4bd   :  { %v2397_v14 = vmul.f32 %v3631_v21, %v2297_v49  ;;  %v2239_v11 = vpop.permute.xlu1 %2238  ;;  %vm1894_vm4 = vcmp.eq.s32.totalorder %v5205_v52, 1 }
 0x4be   :  { %v2556_v56 = vsel %vm2540_vm9, %v2396_v9, %v4733_v18  ;;  %v5192_v18 = vld [vmem:[#allocation33_spill] sm:$0xff]  ;;  %v2336_v17 = vmul.f32 %v2239_v11, %v5193_v62 }
 0x4bf   :  { %v2557_v43 = vsel %vm2541_vm10, %v2397_v14, %v4729_v6  ;;  %v5206_v14 = vld [vmem:[#allocation36_spill] sm:$0xff] }
 0x4c0   :  { %v2617_v59 = vpack.c.bf16 %v2557_v43, %v2556_v56  ;;  %vm1893_vm5 = vcmp.eq.s32.totalorder %v5206_v14, 1 }
 0x4c1   :  { %v2271_v25 = vpop.permute.xlu1 %2270 }
 0x4c2   :  { %v2352_v10 = vmul.f32 %v2271_v25, %v4948_v15  ;;  %v5207_v25 = vld [vmem:[#allocation32_spill] sm:$0xff] }
 0x4c4   :  { %v2368_v20 = vadd.f32 %v2352_v10, %v2336_v17  ;;  %v3451_v10 = vld [vmem:[%s5106_s1 + $0x8] sm:$0xff]  }
 0x4c5   :  { %v2235_v28 = vpop.permute.xlu1 %2234 }
 0x4c6   :  { %v5065_v44 = vpop.permute.xlu0 %1879  ;;  %v2334_v31 = vmul.f32 %v2235_v28, %v5194_v32  ;;  %3636 = vtanh.f32 %v2368_v20  ;;  %v5209_v28 = vld [vmem:[#allocation30_spill] sm:$0xff] }
 0x4c7   :  { %v3633_v40 = vpop.eup %3632  ;;  %vm1896_vm2 = vcmp.eq.s32.totalorder %v5065_v44, 1  ;;  %v5208_v44 = vld [vmem:[#allocation31_spill] sm:$0xff] }
 0x4c8   :  { %v3635_v4 = vpop.eup %3634  ;;  %v2394_v7 = vmul.f32 %v3633_v40, %v2291_v29  ;;  %v1262_v29 = vsel %vm1246_vm1, %v5204_v39, 0.0 }
 0x4c9   :  { %v2395_v42 = vmul.f32 %v3635_v4, %v2293_v41  ;;  %v2267_v54 = vpop.permute.xlu1 %2266  ;;  %v1912_v41 = vsel %vm1896_vm2, %v5207_v25, %v1263_v51  ;;  %v1910_v4 = vsel %vm1894_vm4, %v5209_v28, %v1261_v35 }
 0x4ca   :  { %v2241_v63 = vpop.permute.xlu0 %2240  ;;  %v2554_v22 = vsel %vm2538_vm11, %v2394_v7, %v5191_v13  ;;  %v2350_v3 = vmul.f32 %v2267_v54, %v4978_v26  ;;  %v5210_v13 = vld [vmem:[#allocation29_spill] sm:$0xff] }
 0x4cb   :  { %v2555_v37 = vsel %vm2539_vm12, %v2395_v42, %v5192_v18  ;;  %v2337_v24 = vmul.f32 %v2241_v63, %v5195_v55 }
 0x4cc   :  { %v2616_v6 = vpack.c.bf16 %v2555_v37, %v2554_v22  ;;  %v2366_v47 = vadd.f32 %v2350_v3, %v2334_v31  ;;  %v1909_v22 = vsel %vm1893_vm5, %v5210_v13, %v1260_v8 }
 0x4ce   :  { %3347 = vmatprep.mubr.bf16.mxu0 %v2616_v6  ;;  %v2273_v16 = vpop.permute.xlu0 %2272  ;;  %3638 = vtanh.f32 %v2366_v47 }
 0x4cf   :  { %3348 = vmatmul.mubr.bf16.gmra.mxu0 %v2617_v59  ;;  %v2353_v45 = vmul.f32 %v2273_v16, %v4961_v61  ;;  %v3450_v16 = vld [vmem:[%s5106_s1] sm:$0xff]   ;;  %s3674_s1 = smov [#allocation6]  }
 0x4d0   :  { %s2969_s16 = sshll.u32 %s3674_s1, 4  ;;  %s2970_s16 = int_to_ptr.vmem [resolvable:$true] %s2969_s16 }
 0x4d1   :  { %v2369_v34 = vadd.f32 %v2353_v45, %v2337_v24  ;;  %s3646_s17 = scalar_lea.vmem %s2970_s16, 2048  ;;  %p3651_p1 = scmp.lt.s32.totalorder %s2970_s16, %s2970_s16 }
 0x4d2   :  { %v2237_v53 = vpop.permute.xlu0 %2236  ;;  %p3647_p0 = scmp.ne.s32.totalorder %s2970_s16, %s3646_s17  ;;  %p3652_p2 = scmp.lt.s32.totalorder %s3646_s17, %s3646_s17 }
 0x4d3   :  { %v2335_v15 = vmul.f32 %v2237_v53, %v5196_v38  ;;  %3640 = vtanh.f32 %v2369_v34  ;;  %v3637_v36 = vpop.eup %3636 }
 0x4d4   :  { %p3653_p3 = por %p3652_p2, %p3651_p1 }
 0x4d6   :  { %v1877_v60 = vpop.permute.xlu1 %1876  ;;  %v2269_v5 = vpop.permute.xlu0 %2268  ;;  %p3654_p4 = pnand %p3653_p3, %p3647_p0 }
 0x4d7   :  { %v2351_v49 = vmul.f32 %v2269_v5, %v4986_v33  ;;  %vm1895_vm3 = vcmp.eq.s32.totalorder %v1877_v60, 1 }
 0x4d8   :  { %v1911_v40 = vsel %vm1895_vm3, %v5208_v44, %v1262_v29 }
 0x4d9   :  { %v2367_v26 = vadd.f32 %v2351_v49, %v2335_v15 }
 0x4da   :  { %v2520_v46 = vpop.permute.xlu1 %2519  ;;  %v2523_v61 = vpop.permute.xlu0 %2522 }
 0x4db   :  { %3642 = vtanh.f32 %v2367_v26  ;;  %v3639_v33 = vpop.eup %3638  ;;  %vm2542_vm8 = vcmp.eq.s32.totalorder %v2520_v46, 1  ;;  %vm2543_vm9 = vcmp.eq.s32.totalorder %v2523_v61, 1 }
 0x4de   :  { %v2526_v30 = vpop.permute.xlu1 %2525  ;;  %v2529_v19 = vpop.permute.xlu0 %2528 }
 0x4df   :  { %vm2544_vm6 = vcmp.eq.s32.totalorder %v2526_v30, 1  ;;  %vm2545_vm7 = vcmp.eq.s32.totalorder %v2529_v19, 1 }
 0x4e0   :  { %v3641_v0 = vpop.eup %3640 }
 0x4e2   :  { %v2299_v27 = vpop.permute.xlu1 %2298  ;;  %v2301_v50 = vpop.permute.xlu0 %2300 }
 0x4e3   :  { %v2398_v11 = vmul.f32 %v3639_v33, %v2299_v27 }
 0x4e4   :  { %v3363_v17 = vpop.f32.mrf.mxu1 }
 0x4e5   :  { %v2558_v37 = vsel %vm2542_vm8, %v2398_v11, %v1909_v22 }
 0x4e6   :  { %v2303_v21 = vpop.permute.xlu1 %2302  ;;  %v2305_v9 = vpop.permute.xlu0 %2304 }
 0x4e7   :  { %v2400_v56 = vmul.f32 %v3637_v36, %v2303_v21  ;;  %v2401_v43 = vmul.f32 %v3641_v0, %v2305_v9  ;;  %v2901_v32 = vpop.f32.mrf.mxu1 }
 0x4e8   :  { %v3643_v59 = vpop.eup %3642 }
 0x4e9   :  { %v2399_v7 = vmul.f32 %v3643_v59, %v2301_v50  ;;  %v2560_v42 = vsel %vm2544_vm6, %v2400_v56, %v1911_v40  ;;  %v2561_v63 = vsel %vm2545_vm7, %v2401_v43, %v1912_v41  ;;  %v3364_v20 = vpop.f32.mrf.mxu1 }
 0x4ea   :  { %v2619_v18 = vpack.c.bf16 %v2561_v63, %v2560_v42 }
 0x4eb   :  { %v2559_v6 = vsel %vm2543_vm9, %v2399_v7, %v1910_v4  ;;  %v2904_v60 = vpop.f32.mrf.mxu1 }
 0x4ec   :  { %v2618_v54 = vpack.c.bf16 %v2559_v6, %v2558_v37 }
 0x4ee   :  { %3351 = vmatprep.mubr.bf16.mxu0 %v2618_v54 }
 0x4ef   :  { %3352 = vmatmul.mubr.bf16.gmra.mxu0 %v2619_v18 }
 0x4f0   :  { %3357 = vmatprep.mubr.msk.bf16.mxu0 %vm214_vm0, %v3450_v16 }
 0x4f1   :  { %v3367_v49 = vpop.f32.mrf.mxu1 }
 0x4f3   :  { %v2917_v26 = vpop.f32.mrf.mxu1 }
 0x4f5   :  { %v3368_v61 = vpop.f32.mrf.mxu1 }
 0x4f7   :  { %3358 = vmatmul.mubr.msk.bf16.vlgmr.msra.gmra.mxu0 %vm214_vm0, %v3451_v10  ;;  %v2920_v50 = vpop.f32.mrf.mxu1 }
 0x52c   :  { %v3371_v36 = vpop.f32.mrf.mxu1 }
 0x52e   :  { %v2933_v33 = vpop.f32.mrf.mxu1 }
 0x530   :  { %v3372_v35 = vpop.f32.mrf.mxu1 }
 0x532   :  { %v2936_v51 = vpop.f32.mrf.mxu1 }
 0x542   :  { %v3341_v3 = vpop.f32.mrf.mxu0 }
 0x544   :  { %v2718_v62 = vpop.f32.mrf.mxu0 }
 0x546   :  { %v3342_v45 = vpop.f32.mrf.mxu0 }
 0x548   :  { %v2721_v31 = vpop.f32.mrf.mxu0 }
 0x57a   :  { %v3345_v53 = vpop.f32.mrf.mxu0 }
 0x57b   :  { %v2910_v55 = vadd.f32 %v3363_v17, %v3345_v53 }
 0x57c   :  { %v2734_v24 = vpop.f32.mrf.mxu0 }
 0x57d   :  { %2954 = vst [vmem:[#allocation6 + $0x30] sm:$0xff] %v2910_v55  ;;  %v2902_v47 = vadd.f32 %v2901_v32, %v2734_v24 }
 0x57e   :  { %v3346_v34 = vpop.f32.mrf.mxu0 }
 0x57f   :  { %2952 = vst [vmem:[#allocation6 + $0x20] sm:$0xff] %v2902_v47  ;;  %v2913_v5 = vadd.f32 %v3364_v20, %v3346_v34 }
 0x580   :  { %v2737_v38 = vpop.f32.mrf.mxu0 }
 0x581   :  { %2955 = vst [vmem:[#allocation6 + $0x38] sm:$0xff] %v2913_v5  ;;  %v2905_v15 = vadd.f32 %v2904_v60, %v2737_v38 }
 0x583   :  { %2953 = vst [vmem:[#allocation6 + $0x28] sm:$0xff] %v2905_v15 }
 0x58f   :  { %v3349_v46 = vpop.f32.mrf.mxu0 }
 0x590   :  { %v2926_v30 = vadd.f32 %v3367_v49, %v3349_v46 }
 0x591   :  { %v2750_v19 = vpop.f32.mrf.mxu0 }
 0x592   :  { %2958 = vst [vmem:[#allocation6 + $0x50] sm:$0xff] %v2926_v30  ;;  %v2918_v1 = vadd.f32 %v2917_v26, %v2750_v19 }
 0x593   :  { %v3350_v27 = vpop.f32.mrf.mxu0 }
 0x594   :  { %2956 = vst [vmem:[#allocation6 + $0x40] sm:$0xff] %v2918_v1  ;;  %v2929_v48 = vadd.f32 %v3368_v61, %v3350_v27 }
 0x595   :  { %v2753_v57 = vpop.f32.mrf.mxu0 }
 0x596   :  { %2959 = vst [vmem:[#allocation6 + $0x58] sm:$0xff] %v2929_v48  ;;  %v2921_v58 = vadd.f32 %v2920_v50, %v2753_v57 }
 0x598   :  { %2957 = vst [vmem:[#allocation6 + $0x48] sm:$0xff] %v2921_v58 }
 0x5af   :  { %v3353_v12 = vpop.f32.mrf.mxu0 }
 0x5b0   :  { %v2942_v0 = vadd.f32 %v3371_v36, %v3353_v12 }
 0x5b1   :  { %v2766_v2 = vpop.f32.mrf.mxu0 }
 0x5b2   :  { %2962 = vst [vmem:[#allocation6 + $0x70] sm:$0xff] %v2942_v0  ;;  %v2934_v8 = vadd.f32 %v2933_v33, %v2766_v2 }
 0x5b3   :  { %v3354_v23 = vpop.f32.mrf.mxu0 }
 0x5b4   :  { %2960 = vst [vmem:[#allocation6 + $0x60] sm:$0xff] %v2934_v8  ;;  %v2945_v39 = vadd.f32 %v3372_v35, %v3354_v23 }
 0x5b5   :  { %v2769_v29 = vpop.f32.mrf.mxu0 }
 0x5b6   :  { %2963 = vst [vmem:[#allocation6 + $0x78] sm:$0xff] %v2945_v39  ;;  %v2937_v52 = vadd.f32 %v2936_v51, %v2769_v29 }
 0x5b7   :  { %v3359_v21 = vpop.f32.mrf.mxu0 }
 0x5b8   :  { %2961 = vst [vmem:[#allocation6 + $0x68] sm:$0xff] %v2937_v52  ;;  %v2894_v9 = vadd.f32 %v3359_v21, %v3341_v3 }
 0x5b9   :  { %v2885_v14 = vpop.f32.mrf.mxu0 }
 0x5ba   :  { %2950 = vst [vmem:[#allocation6 + $0x10] sm:$0xff] %v2894_v9  ;;  %v2886_v11 = vadd.f32 %v2885_v14, %v2718_v62 }
 0x5bb   :  { %v3360_v56 = vpop.f32.mrf.mxu0 }
 0x5bc   :  { %2948 = vst [vmem:[#allocation6] sm:$0xff] %v2886_v11  ;;  %v2897_v43 = vadd.f32 %v3360_v56, %v3342_v45 }
 0x5bd   :  { %v2888_v59 = vpop.f32.mrf.mxu0 }
 0x5be   :  { %2951 = vst [vmem:[#allocation6 + $0x18] sm:$0xff] %v2897_v43  ;;  %v2889_v25 = vadd.f32 %v2888_v59, %v2721_v31 }
 0x5c0   :  { %2949 = vst [vmem:[#allocation6 + $0x8] sm:$0xff] %v2889_v25 }
 0x5c1   :  { %3657 = shalt.err (!%p3654_p4)
}
 0x5c2   :  { %s3675_s18 = smov 128   ;;  %s3676_s3 = smov 8  }
 0x5c3   :  { %2975 = dma.vmem_to_hbm [thread:$0]  %s2970_s16, 2048, %s5113_s8, [#allocation7], %s3675_s18, %s3675_s18, %s3676_s3  }
 0x5c4   :  { %3666 = dma.done.wait [#allocation7], 2048  }
 0x5c5   :  { %3667 = vsyncadd [#allocation7], 4294965248 }
 0x5c6   :  { %2979 = vsyncpa [#allocation7], 1 }

</bundles_post_ra>
